<compile_context>
chip_gen: v7x
topology: tpu7x:2x2x1
jax: 0.10.0
libtpu: 0.0.40
codegen_flags: <defaults>
</compile_context>

<pallas_src>
import functools

import numpy as np
import jax
import jax.numpy as jnp
from jax.experimental import pallas as pl
from jax.experimental.pallas import tpu as pltpu


# ----------------------------------------------------------------------------
# Kernel 1: patch-embed stand-in with the 1x1x1 matching conv folded in.
#           Produces P = [py | px] per pixel, Wf on the lane axis.
# ----------------------------------------------------------------------------
def _pxpy_kernel(pat_ref, w_ref, brow_ref, p_ref):
    # pat_ref : (Hf, K, 2*Wf)  stacked [y-patches | x-patches]
    # w_ref   : (1,  K, 2*Wf)  folded weights  [w_py | w_px] per column
    # brow_ref: (1,     2*Wf)  folded biases   [b_py | b_px] per column
    # p_ref   : (Hf,    2*Wf)  output          [py   | px  ]
    pat = pat_ref[...]
    w = w_ref[...]
    hf, K, w2 = pat.shape
    acc = jnp.zeros((hf, w2), jnp.float32) + brow_ref[...]
    for k in range(K):                       # unrolled full-lane VPU FMAs
        acc = acc + pat[:, k, :] * w[:, k, :]
    p_ref[...] = acc


def pxpy(pat, w_stack, brow):
    B, Hf, K, W2 = pat.shape
    return pl.pallas_call(
        _pxpy_kernel,
        out_shape=jax.ShapeDtypeStruct((B, Hf, W2), jnp.float32),
        grid=(B,),
        in_specs=[
            pl.BlockSpec((None, Hf, K, W2), lambda b: (b, 0, 0, 0)),
            pl.BlockSpec((1, K, W2), lambda b: (0, 0, 0)),
            pl.BlockSpec((1, W2), lambda b: (0, 0)),
        ],
        out_specs=pl.BlockSpec((None, Hf, W2), lambda b: (b, 0, 0)),
        compiler_params=pltpu.CompilerParams(
            dimension_semantics=("parallel",),
        ),
    )(pat, w_stack, brow)


# ----------------------------------------------------------------------------
# Kernel 2 (fused): cost volume + 1x1x1 matching conv + full trilinear
#                   upsample + Softmin + DisparityRegression.
#
# Grid (B, Md_chunks).  The Md axis is an online-softmin reduction; the
# matching volume never leaves VMEM.
# ----------------------------------------------------------------------------
def _fused_cost_disp_kernel(p_ref, g_ref, bias_ref, wh_ref, wwt_ref, o_ref,
                            mmax_ref, num_ref, den_ref, *, ho_chunk):
    # p_ref   : (Hf, 2*Wf)          f32   [py | px] for this batch element
    # g_ref   : (2*Wf, mdc*Wf)      bf16  folded cost/match/D-upsample chunk
    # bias_ref: (1, mdc*Wf)         f32
    # wh_ref  : (Ho, Hf)            f32   H-leg interpolation matrix
    # wwt_ref : (Wf, Wo)            f32   W-leg interpolation matrix (transposed)
    # o_ref   : (Ho, Wo)            f32   output disparity for this batch element
    # scratch : mmax/num/den        f32   (Ho, Wo) online-softmin accumulators
    mc = pl.program_id(1)
    n_mc = pl.num_programs(1)
    Hf, two_wf = p_ref.shape
    Wf = two_wf // 2
    mdc = g_ref.shape[1] // Wf
    Ho, Wo = o_ref.shape

    @pl.when(mc == 0)
    def _():
        mmax_ref[...] = jnp.full((Ho, Wo), -jnp.inf, jnp.float32)
        num_ref[...] = jnp.zeros((Ho, Wo), jnp.float32)
        den_ref[...] = jnp.zeros((Ho, Wo), jnp.float32)

    # (1) cost volume + 1x1x1 matching conv + D-leg trilinear upsample folded
    #     into ONE lane-dense MXU matmul (bf16 operands, f32 accumulation):
    #       u[h, m*Wf + w] = sum_{w'} py[h,w']*Bmat[m,w',w]
    #                      + px[h,w]*A[m,w] + bias[m]
    p_bf = p_ref[...].astype(jnp.bfloat16)
    u = jnp.dot(p_bf, g_ref[...], preferred_element_type=jnp.float32)
    u = u + bias_ref[...]                       # (Hf, mdc*Wf), stays in VMEM
    u_bf = u.astype(jnp.bfloat16)

    wwt_bf = wwt_ref[...].astype(jnp.bfloat16)
    dval = (jax.lax.broadcasted_iota(jnp.int32, (mdc, ho_chunk, Wo), 0)
            + mc * mdc).astype(jnp.float32)     # disparity values of this chunk

    # (2)-(4) stream over Ho chunks so EUP exps overlap later MXU work and
    # intermediates stay small.  (ho_chunk is static; loop is unrolled.)
    for j in range(Ho // ho_chunk):
        r0 = j * ho_chunk
        rows = pl.ds(r0, ho_chunk)

        # (2) H-leg of the trilinear upsample: one large 2D matmul,
        #     lane-dense (mdc*Wf) output.
        wh_blk = wh_ref[rows, :].astype(jnp.bfloat16)          # (ho_chunk, Hf)
        v = jnp.dot(wh_blk, u_bf,
                    preferred_element_type=jnp.float32)        # (ho_chunk, mdc*Wf)

        # (3) W-leg: one (ho_chunk, Wf) @ (Wf, Wo) matmul per disparity slice.
        neg_parts = []
        for m in range(mdc):
            v_m = v[:, m * Wf:(m + 1) * Wf].astype(jnp.bfloat16)
            neg_parts.append(-jnp.dot(v_m, wwt_bf,
                                      preferred_element_type=jnp.float32))
        neg = jnp.stack(neg_parts, axis=0)                     # (mdc, ho_chunk, Wo)

        # (4) online Softmin + DisparityRegression accumulation (f32 VPU math).
        cmax = jnp.max(neg, axis=0)                            # (ho_chunk, Wo)
        m_old = mmax_ref[rows, :]
        m_new = jnp.maximum(m_old, cmax)
        alpha = jnp.exp(m_old - m_new)
        e = jnp.exp(neg - m_new[None, :, :])
        den_ref[rows, :] = den_ref[rows, :] * alpha + jnp.sum(e, axis=0)
        num_ref[rows, :] = num_ref[rows, :] * alpha + jnp.sum(e * dval, axis=0)
        mmax_ref[rows, :] = m_new

    @pl.when(mc == n_mc - 1)
    def _():
        # Exact divide in the epilogue (cheap; avoids approx-reciprocal bias).
        o_ref[...] = num_ref[...] / den_ref[...]


def fused_cost_disp(p_feat, g, bias_flat, wh, wwt, *, md_chunk, ho_chunk):
    B, Hf, two_wf = p_feat.shape
    Wf = two_wf // 2
    Md = g.shape[1] // Wf
    Ho, Wo = wh.shape[0], wwt.shape[1]
    n_mc = Md // md_chunk
    kernel = functools.partial(_fused_cost_disp_kernel, ho_chunk=ho_chunk)
    return pl.pallas_call(
        kernel,
        out_shape=jax.ShapeDtypeStruct((B, Ho, Wo), jnp.float32),
        grid=(B, n_mc),
        in_specs=[
            pl.BlockSpec((None, Hf, two_wf), lambda b, mc: (b, 0, 0)),
            pl.BlockSpec((two_wf, md_chunk * Wf), lambda b, mc: (0, mc)),
            pl.BlockSpec((1, md_chunk * Wf), lambda b, mc: (0, mc)),
            pl.BlockSpec((Ho, Hf), lambda b, mc: (0, 0)),
            pl.BlockSpec((Wf, Wo), lambda b, mc: (0, 0)),
        ],
        out_specs=pl.BlockSpec((None, Ho, Wo), lambda b, mc: (b, 0, 0)),
        scratch_shapes=[
            pltpu.VMEM((Ho, Wo), jnp.float32),   # running max of -t
            pltpu.VMEM((Ho, Wo), jnp.float32),   # softmin numerator (sum e*d)
            pltpu.VMEM((Ho, Wo), jnp.float32),   # softmin denominator (sum e)
        ],
        compiler_params=pltpu.CompilerParams(
            dimension_semantics=("parallel", "arbitrary"),
            # 48 MiB is safe on every generation (v7x has 64 MiB physical);
            # on v5e/v6e this could be raised and md_chunk/ho_chunk grown.
            vmem_limit_bytes=48 * 1024 * 1024,
        ),
    )(p_feat, g, bias_flat, wh, wwt)


# ----------------------------------------------------------------------------
# Host-side glue
# ----------------------------------------------------------------------------
def upsample_matrix(in_size, out_size):
    """Row-stochastic 1D linear-interp matrix (PyTorch align_corners=False)."""
    scale = in_size / out_size
    o = np.arange(out_size)
    src = np.maximum((o + 0.5) * scale - 0.5, 0.0)
    i0 = np.minimum(np.floor(src).astype(np.int64), in_size - 1)
    i1 = np.minimum(i0 + 1, in_size - 1)
    w1 = (src - i0).astype(np.float32)
    w0 = (1.0 - w1).astype(np.float32)
    m = np.zeros((out_size, in_size), dtype=np.float32)
    np.add.at(m, (o, i0), w0)
    np.add.at(m, (o, i1), w1)
    return m


def im2col_3x3_stride3(img):
    """(B, Ci, H, W) -> (B*Hf*Wf, Ci*9), k ordered (Ci, dy, dx).  (reference)"""
    B, Ci, H, W = img.shape
    Hf, Wf = H // 3, W // 3
    p = img.reshape(B, Ci, Hf, 3, Wf, 3)
    p = p.transpose(0, 2, 4, 1, 3, 5)
    return p.reshape(B * Hf * Wf, Ci * 9)


def _patchify_lanes(img):
    """(B, Ci, H, W) -> (B, Hf, Ci*9, Wf): patch-k on sublanes, Wf on lanes."""
    B, Ci, H, W = img.shape
    Hf, Wf = H // 3, W // 3
    p = img.reshape(B, Ci, Hf, 3, Wf, 3)
    p = p.transpose(0, 2, 1, 3, 5, 4)          # (B, Hf, Ci, dy, dx, Wf)
    return p.reshape(B, Hf, Ci * 9, Wf)


def hybrid_stereonet_forward(x, y, params, maxdisp, *, md_chunk=8, ho_chunk=24):
    w_e, b_e, w_m, b_m = params
    B, Ci, H, W = x.shape
    assert H % 3 == 0 and W % 3 == 0 and maxdisp % 3 == 0
    Hf, Wf = H // 3, W // 3
    D = maxdisp // 3
    Md, Ho, Wo = maxdisp, 3 * Hf, 3 * Wf
    C = w_e.shape[1]
    K = Ci * 9

    # Fall back to a single (full) disparity chunk if the requested chunk does
    # not give 128-aligned lane blocks.
    if Md % md_chunk != 0 or (md_chunk * Wf) % 128 != 0:
        md_chunk = Md
    if Ho % ho_chunk != 0 or ho_chunk % 8 != 0:
        ho_chunk = Ho

    # ---- fold the 1x1x1 matching conv into the (linear) patch-embed ---------
    # TODO(synk): real FeatureNet is a Swin transformer; real newMatching is a
    # NAS 3D conv net (sources not provided) - this fold is only valid for the
    # linear stand-ins.
    w_px = (w_e @ w_m[:C]).reshape(K)
    w_py = (w_e @ w_m[C:]).reshape(K)
    b_px = (b_e @ w_m[:C]).reshape(())
    b_py = (b_e @ w_m[C:]).reshape(())
    w_stack = jnp.concatenate(
        [jnp.broadcast_to(w_py[:, None], (K, Wf)),
         jnp.broadcast_to(w_px[:, None], (K, Wf))], axis=1)[None]     # (1,K,2Wf)
    brow = jnp.concatenate(
        [jnp.full((Wf,), b_py), jnp.full((Wf,), b_px)])[None]         # (1,2Wf)

    pat = jnp.concatenate([_patchify_lanes(y), _patchify_lanes(x)], axis=-1)
    p_feat = pxpy(pat, w_stack, brow)                                 # (B,Hf,2Wf)

    # ---- host constants folding mask + shift + D-axis interpolation ---------
    wd = upsample_matrix(D, Md)                                       # (Md, D)
    wh = jnp.asarray(upsample_matrix(Hf, Ho))                         # (Ho, Hf)
    wwt = jnp.asarray(upsample_matrix(Wf, Wo).T)                      # (Wf, Wo)

    d_idx = np.arange(D)
    w_idx = np.arange(Wf)
    a_mat = wd @ (w_idx[None, :] >= d_idx[:, None]).astype(np.float32)  # (Md,Wf)
    b_np = np.zeros((Md, Wf, Wf), np.float32)
    for wp in range(Wf):
        hi = min(wp + D, Wf)
        b_np[:, wp, wp:hi] = wd[:, : hi - wp]
    # G: first Wf K-rows multiply py (shifted Toeplitz band), last Wf K-rows
    # multiply px (diag(A[m])).  Column index = m*Wf + w  (lane-dense).
    g_np = np.zeros((2 * Wf, Md * Wf), np.float32)
    g_np[:Wf, :] = b_np.transpose(1, 0, 2).reshape(Wf, Md * Wf)
    for m in range(Md):
        g_np[Wf + np.arange(Wf), m * Wf + np.arange(Wf)] = a_mat[m]
    g = jnp.asarray(g_np, jnp.bfloat16)                               # bf16 weights
    bias_flat = b_m[0, 0] * jnp.asarray(np.repeat(wd.sum(axis=1), Wf))[None, :]

    # ---- fused cost volume + matching + trilinear upsample + Disp head ------
    return fused_cost_disp(p_feat, g, bias_flat, wh, wwt,
                           md_chunk=md_chunk, ho_chunk=ho_chunk)


# ----------------------------------------------------------------------------
# Pure-JAX reference (same stand-in parameters) for a correctness check
# ----------------------------------------------------------------------------
def reference_forward(x, y, params, maxdisp):
    w_e, b_e, w_m, b_m = params
    B, Ci, H, W = x.shape
    Hf, Wf = H // 3, W // 3
    D = maxdisp // 3
    C = w_e.shape[1]

    def feat(img):
        f = im2col_3x3_stride3(img) @ w_e + b_e
        return f.reshape(B, Hf, Wf, C).transpose(0, 3, 1, 2)   # NCHW

    xf, yf = feat(x), feat(y)
    cost = jnp.zeros((B, 2 * C, D, Hf, Wf), jnp.float32)
    for i in range(D):
        cost = cost.at[:, :C, i, :, i:].set(xf[:, :, :, i:])
        cost = cost.at[:, C:, i, :, i:].set(yf[:, :, :, : Wf - i])
    c = jnp.einsum('bcdhw,co->bdhwo', cost, w_m)[..., 0] + b_m[0, 0]

    Md, Ho, Wo = maxdisp, 3 * Hf, 3 * Wf
    wd = upsample_matrix(D, Md)
    wh = upsample_matrix(Hf, Ho)
    ww = upsample_matrix(Wf, Wo)
    up = jnp.einsum('bdhw,Dd->bDhw', c, wd)
    up = jnp.einsum('bdhw,Hh->bdHw', up, wh)
    up = jnp.einsum('bdhw,Ww->bdhW', up, ww)
    p = jax.nn.softmax(-up, axis=1)
    dvals = jnp.arange(Md, dtype=jnp.float32).reshape(1, Md, 1, 1)
    return jnp.sum(p * dvals, axis=1)


# ----------------------------------------------------------------------------
if __name__ == "__main__":
    B, Ci, H, W = 2, 3, 48, 48     # small image, divisible by 3 -> Hf = Wf = 16
    C = 8                          # feature channels (stand-in for embed dim)
    maxdisp = 24                   # -> D = 8 hypotheses at 1/3 res, Md = 24

    key = jax.random.PRNGKey(0)
    k1, k2, k3, k4, k5, k6 = jax.random.split(key, 6)
    x = jax.random.normal(k1, (B, Ci, H, W), jnp.float32)
    y = jax.random.normal(k2, (B, Ci, H, W), jnp.float32)
    w_e = 0.1 * jax.random.normal(k3, (Ci * 9, C), jnp.float32)
    b_e = 0.1 * jax.random.normal(k4, (1, C), jnp.float32)
    w_m = 0.1 * jax.random.normal(k5, (2 * C, 1), jnp.float32)
    b_m = 0.1 * jax.random.normal(k6, (1, 1), jnp.float32)
    params = (w_e, b_e, w_m, b_m)

    # md_chunk=8 -> 3 Md chunks (exercises the online-softmin reduction);
    # ho_chunk=24 -> 2 Ho chunks (exercises the streamed epilogue).
    disp = hybrid_stereonet_forward(x, y, params, maxdisp,
                                    md_chunk=8, ho_chunk=24)
    disp = jax.block_until_ready(disp)

    ref = reference_forward(x, y, params, maxdisp)
    assert disp.shape == (B, H, W), disp.shape
    max_err = float(jnp.max(jnp.abs(disp - ref)))
    # bf16 MXU operands with f32 accumulation -> small mixed-precision delta.
    assert bool(jnp.allclose(disp, ref, atol=5e-2, rtol=5e-2)), max_err

    print("KERNEL_OK")
</pallas_src>

<mosaic_0001>
module attributes {stable_mosaic.version = 11 : i64} {
  func.func @_pxpy_kernel(%arg0: i32, %arg1: memref<1x16x27x32xf32, #tpu.memory_space<vmem>>, %arg2: memref<1x27x32xf32, #tpu.memory_space<vmem>>, %arg3: memref<1x32xf32, #tpu.memory_space<vmem>>, %arg4: memref<1x16x32xf32, #tpu.memory_space<vmem>>) attributes {dimension_semantics = [#tpu.dimension_semantics<parallel>], iteration_bounds = array<i64: 2>, scalar_prefetch = 0 : i64, scratch_operands = 0 : i64, tpu.core_type = #tpu.core_type<tc>, window_params = [{transform_indices = @transform_0, window_bounds = array<i64: 1, 16, 27, 32>}, {pipeline_mode = #tpu.pipeline_mode<synchronous>, transform_indices = @transform_1, window_bounds = array<i64: 1, 27, 32>}, {pipeline_mode = #tpu.pipeline_mode<synchronous>, transform_indices = @transform_2, window_bounds = array<i64: 1, 32>}, {transform_indices = @transform_3, window_bounds = array<i64: 1, 16, 32>}]} {
    %c0 = arith.constant 0 : index
    %c0_0 = arith.constant 0 : index
    %c0_1 = arith.constant 0 : index
    %c0_2 = arith.constant 0 : index
    %0 = vector.load %arg1[%c0, %c0_0, %c0_1, %c0_2] : memref<1x16x27x32xf32, #tpu.memory_space<vmem>>, vector<1x16x27x32xf32>
    %1 = vector.shape_cast %0 : vector<1x16x27x32xf32> to vector<16x27x32xf32>
    %c0_3 = arith.constant 0 : index
    %c0_4 = arith.constant 0 : index
    %c0_5 = arith.constant 0 : index
    %2 = vector.load %arg2[%c0_3, %c0_4, %c0_5] : memref<1x27x32xf32, #tpu.memory_space<vmem>>, vector<1x27x32xf32>
    %cst = arith.constant 0.000000e+00 : f32
    %3 = vector.broadcast %cst : f32 to vector<16x32xf32>
    %c0_6 = arith.constant 0 : index
    %c0_7 = arith.constant 0 : index
    %4 = vector.load %arg3[%c0_6, %c0_7] : memref<1x32xf32, #tpu.memory_space<vmem>>, vector<1x32xf32>
    %5 = vector.broadcast %4 : vector<1x32xf32> to vector<16x32xf32>
    %6 = arith.addf %3, %5 : vector<16x32xf32>
    %7 = vector.extract_strided_slice %1 {offsets = [0, 0, 0], sizes = [16, 1, 32], strides = [1, 1, 1]} : vector<16x27x32xf32> to vector<16x1x32xf32>
    %8 = vector.shape_cast %7 : vector<16x1x32xf32> to vector<16x32xf32>
    %9 = vector.extract_strided_slice %2 {offsets = [0, 0, 0], sizes = [1, 1, 32], strides = [1, 1, 1]} : vector<1x27x32xf32> to vector<1x1x32xf32>
    %10 = vector.shape_cast %9 : vector<1x1x32xf32> to vector<1x32xf32>
    %11 = vector.broadcast %10 : vector<1x32xf32> to vector<16x32xf32>
    %12 = arith.mulf %8, %11 : vector<16x32xf32>
    %13 = arith.addf %6, %12 : vector<16x32xf32>
    %14 = vector.extract_strided_slice %1 {offsets = [0, 1, 0], sizes = [16, 1, 32], strides = [1, 1, 1]} : vector<16x27x32xf32> to vector<16x1x32xf32>
    %15 = vector.shape_cast %14 : vector<16x1x32xf32> to vector<16x32xf32>
    %16 = vector.extract_strided_slice %2 {offsets = [0, 1, 0], sizes = [1, 1, 32], strides = [1, 1, 1]} : vector<1x27x32xf32> to vector<1x1x32xf32>
    %17 = vector.shape_cast %16 : vector<1x1x32xf32> to vector<1x32xf32>
    %18 = vector.broadcast %17 : vector<1x32xf32> to vector<16x32xf32>
    %19 = arith.mulf %15, %18 : vector<16x32xf32>
    %20 = arith.addf %13, %19 : vector<16x32xf32>
    %21 = vector.extract_strided_slice %1 {offsets = [0, 2, 0], sizes = [16, 1, 32], strides = [1, 1, 1]} : vector<16x27x32xf32> to vector<16x1x32xf32>
    %22 = vector.shape_cast %21 : vector<16x1x32xf32> to vector<16x32xf32>
    %23 = vector.extract_strided_slice %2 {offsets = [0, 2, 0], sizes = [1, 1, 32], strides = [1, 1, 1]} : vector<1x27x32xf32> to vector<1x1x32xf32>
    %24 = vector.shape_cast %23 : vector<1x1x32xf32> to vector<1x32xf32>
    %25 = vector.broadcast %24 : vector<1x32xf32> to vector<16x32xf32>
    %26 = arith.mulf %22, %25 : vector<16x32xf32>
    %27 = arith.addf %20, %26 : vector<16x32xf32>
    %28 = vector.extract_strided_slice %1 {offsets = [0, 3, 0], sizes = [16, 1, 32], strides = [1, 1, 1]} : vector<16x27x32xf32> to vector<16x1x32xf32>
    %29 = vector.shape_cast %28 : vector<16x1x32xf32> to vector<16x32xf32>
    %30 = vector.extract_strided_slice %2 {offsets = [0, 3, 0], sizes = [1, 1, 32], strides = [1, 1, 1]} : vector<1x27x32xf32> to vector<1x1x32xf32>
    %31 = vector.shape_cast %30 : vector<1x1x32xf32> to vector<1x32xf32>
    %32 = vector.broadcast %31 : vector<1x32xf32> to vector<16x32xf32>
    %33 = arith.mulf %29, %32 : vector<16x32xf32>
    %34 = arith.addf %27, %33 : vector<16x32xf32>
    %35 = vector.extract_strided_slice %1 {offsets = [0, 4, 0], sizes = [16, 1, 32], strides = [1, 1, 1]} : vector<16x27x32xf32> to vector<16x1x32xf32>
    %36 = vector.shape_cast %35 : vector<16x1x32xf32> to vector<16x32xf32>
    %37 = vector.extract_strided_slice %2 {offsets = [0, 4, 0], sizes = [1, 1, 32], strides = [1, 1, 1]} : vector<1x27x32xf32> to vector<1x1x32xf32>
    %38 = vector.shape_cast %37 : vector<1x1x32xf32> to vector<1x32xf32>
    %39 = vector.broadcast %38 : vector<1x32xf32> to vector<16x32xf32>
    %40 = arith.mulf %36, %39 : vector<16x32xf32>
    %41 = arith.addf %34, %40 : vector<16x32xf32>
    %42 = vector.extract_strided_slice %1 {offsets = [0, 5, 0], sizes = [16, 1, 32], strides = [1, 1, 1]} : vector<16x27x32xf32> to vector<16x1x32xf32>
    %43 = vector.shape_cast %42 : vector<16x1x32xf32> to vector<16x32xf32>
    %44 = vector.extract_strided_slice %2 {offsets = [0, 5, 0], sizes = [1, 1, 32], strides = [1, 1, 1]} : vector<1x27x32xf32> to vector<1x1x32xf32>
    %45 = vector.shape_cast %44 : vector<1x1x32xf32> to vector<1x32xf32>
    %46 = vector.broadcast %45 : vector<1x32xf32> to vector<16x32xf32>
    %47 = arith.mulf %43, %46 : vector<16x32xf32>
    %48 = arith.addf %41, %47 : vector<16x32xf32>
    %49 = vector.extract_strided_slice %1 {offsets = [0, 6, 0], sizes = [16, 1, 32], strides = [1, 1, 1]} : vector<16x27x32xf32> to vector<16x1x32xf32>
    %50 = vector.shape_cast %49 : vector<16x1x32xf32> to vector<16x32xf32>
    %51 = vector.extract_strided_slice %2 {offsets = [0, 6, 0], sizes = [1, 1, 32], strides = [1, 1, 1]} : vector<1x27x32xf32> to vector<1x1x32xf32>
    %52 = vector.shape_cast %51 : vector<1x1x32xf32> to vector<1x32xf32>
    %53 = vector.broadcast %52 : vector<1x32xf32> to vector<16x32xf32>
    %54 = arith.mulf %50, %53 : vector<16x32xf32>
    %55 = arith.addf %48, %54 : vector<16x32xf32>
    %56 = vector.extract_strided_slice %1 {offsets = [0, 7, 0], sizes = [16, 1, 32], strides = [1, 1, 1]} : vector<16x27x32xf32> to vector<16x1x32xf32>
    %57 = vector.shape_cast %56 : vector<16x1x32xf32> to vector<16x32xf32>
    %58 = vector.extract_strided_slice %2 {offsets = [0, 7, 0], sizes = [1, 1, 32], strides = [1, 1, 1]} : vector<1x27x32xf32> to vector<1x1x32xf32>
    %59 = vector.shape_cast %58 : vector<1x1x32xf32> to vector<1x32xf32>
    %60 = vector.broadcast %59 : vector<1x32xf32> to vector<16x32xf32>
    %61 = arith.mulf %57, %60 : vector<16x32xf32>
    %62 = arith.addf %55, %61 : vector<16x32xf32>
    %63 = vector.extract_strided_slice %1 {offsets = [0, 8, 0], sizes = [16, 1, 32], strides = [1, 1, 1]} : vector<16x27x32xf32> to vector<16x1x32xf32>
    %64 = vector.shape_cast %63 : vector<16x1x32xf32> to vector<16x32xf32>
    %65 = vector.extract_strided_slice %2 {offsets = [0, 8, 0], sizes = [1, 1, 32], strides = [1, 1, 1]} : vector<1x27x32xf32> to vector<1x1x32xf32>
    %66 = vector.shape_cast %65 : vector<1x1x32xf32> to vector<1x32xf32>
    %67 = vector.broadcast %66 : vector<1x32xf32> to vector<16x32xf32>
    %68 = arith.mulf %64, %67 : vector<16x32xf32>
    %69 = arith.addf %62, %68 : vector<16x32xf32>
    %70 = vector.extract_strided_slice %1 {offsets = [0, 9, 0], sizes = [16, 1, 32], strides = [1, 1, 1]} : vector<16x27x32xf32> to vector<16x1x32xf32>
    %71 = vector.shape_cast %70 : vector<16x1x32xf32> to vector<16x32xf32>
    %72 = vector.extract_strided_slice %2 {offsets = [0, 9, 0], sizes = [1, 1, 32], strides = [1, 1, 1]} : vector<1x27x32xf32> to vector<1x1x32xf32>
    %73 = vector.shape_cast %72 : vector<1x1x32xf32> to vector<1x32xf32>
    %74 = vector.broadcast %73 : vector<1x32xf32> to vector<16x32xf32>
    %75 = arith.mulf %71, %74 : vector<16x32xf32>
    %76 = arith.addf %69, %75 : vector<16x32xf32>
    %77 = vector.extract_strided_slice %1 {offsets = [0, 10, 0], sizes = [16, 1, 32], strides = [1, 1, 1]} : vector<16x27x32xf32> to vector<16x1x32xf32>
    %78 = vector.shape_cast %77 : vector<16x1x32xf32> to vector<16x32xf32>
    %79 = vector.extract_strided_slice %2 {offsets = [0, 10, 0], sizes = [1, 1, 32], strides = [1, 1, 1]} : vector<1x27x32xf32> to vector<1x1x32xf32>
    %80 = vector.shape_cast %79 : vector<1x1x32xf32> to vector<1x32xf32>
    %81 = vector.broadcast %80 : vector<1x32xf32> to vector<16x32xf32>
    %82 = arith.mulf %78, %81 : vector<16x32xf32>
    %83 = arith.addf %76, %82 : vector<16x32xf32>
    %84 = vector.extract_strided_slice %1 {offsets = [0, 11, 0], sizes = [16, 1, 32], strides = [1, 1, 1]} : vector<16x27x32xf32> to vector<16x1x32xf32>
    %85 = vector.shape_cast %84 : vector<16x1x32xf32> to vector<16x32xf32>
    %86 = vector.extract_strided_slice %2 {offsets = [0, 11, 0], sizes = [1, 1, 32], strides = [1, 1, 1]} : vector<1x27x32xf32> to vector<1x1x32xf32>
    %87 = vector.shape_cast %86 : vector<1x1x32xf32> to vector<1x32xf32>
    %88 = vector.broadcast %87 : vector<1x32xf32> to vector<16x32xf32>
    %89 = arith.mulf %85, %88 : vector<16x32xf32>
    %90 = arith.addf %83, %89 : vector<16x32xf32>
    %91 = vector.extract_strided_slice %1 {offsets = [0, 12, 0], sizes = [16, 1, 32], strides = [1, 1, 1]} : vector<16x27x32xf32> to vector<16x1x32xf32>
    %92 = vector.shape_cast %91 : vector<16x1x32xf32> to vector<16x32xf32>
    %93 = vector.extract_strided_slice %2 {offsets = [0, 12, 0], sizes = [1, 1, 32], strides = [1, 1, 1]} : vector<1x27x32xf32> to vector<1x1x32xf32>
    %94 = vector.shape_cast %93 : vector<1x1x32xf32> to vector<1x32xf32>
    %95 = vector.broadcast %94 : vector<1x32xf32> to vector<16x32xf32>
    %96 = arith.mulf %92, %95 : vector<16x32xf32>
    %97 = arith.addf %90, %96 : vector<16x32xf32>
    %98 = vector.extract_strided_slice %1 {offsets = [0, 13, 0], sizes = [16, 1, 32], strides = [1, 1, 1]} : vector<16x27x32xf32> to vector<16x1x32xf32>
    %99 = vector.shape_cast %98 : vector<16x1x32xf32> to vector<16x32xf32>
    %100 = vector.extract_strided_slice %2 {offsets = [0, 13, 0], sizes = [1, 1, 32], strides = [1, 1, 1]} : vector<1x27x32xf32> to vector<1x1x32xf32>
    %101 = vector.shape_cast %100 : vector<1x1x32xf32> to vector<1x32xf32>
    %102 = vector.broadcast %101 : vector<1x32xf32> to vector<16x32xf32>
    %103 = arith.mulf %99, %102 : vector<16x32xf32>
    %104 = arith.addf %97, %103 : vector<16x32xf32>
    %105 = vector.extract_strided_slice %1 {offsets = [0, 14, 0], sizes = [16, 1, 32], strides = [1, 1, 1]} : vector<16x27x32xf32> to vector<16x1x32xf32>
    %106 = vector.shape_cast %105 : vector<16x1x32xf32> to vector<16x32xf32>
    %107 = vector.extract_strided_slice %2 {offsets = [0, 14, 0], sizes = [1, 1, 32], strides = [1, 1, 1]} : vector<1x27x32xf32> to vector<1x1x32xf32>
    %108 = vector.shape_cast %107 : vector<1x1x32xf32> to vector<1x32xf32>
    %109 = vector.broadcast %108 : vector<1x32xf32> to vector<16x32xf32>
    %110 = arith.mulf %106, %109 : vector<16x32xf32>
    %111 = arith.addf %104, %110 : vector<16x32xf32>
    %112 = vector.extract_strided_slice %1 {offsets = [0, 15, 0], sizes = [16, 1, 32], strides = [1, 1, 1]} : vector<16x27x32xf32> to vector<16x1x32xf32>
    %113 = vector.shape_cast %112 : vector<16x1x32xf32> to vector<16x32xf32>
    %114 = vector.extract_strided_slice %2 {offsets = [0, 15, 0], sizes = [1, 1, 32], strides = [1, 1, 1]} : vector<1x27x32xf32> to vector<1x1x32xf32>
    %115 = vector.shape_cast %114 : vector<1x1x32xf32> to vector<1x32xf32>
    %116 = vector.broadcast %115 : vector<1x32xf32> to vector<16x32xf32>
    %117 = arith.mulf %113, %116 : vector<16x32xf32>
    %118 = arith.addf %111, %117 : vector<16x32xf32>
    %119 = vector.extract_strided_slice %1 {offsets = [0, 16, 0], sizes = [16, 1, 32], strides = [1, 1, 1]} : vector<16x27x32xf32> to vector<16x1x32xf32>
    %120 = vector.shape_cast %119 : vector<16x1x32xf32> to vector<16x32xf32>
    %121 = vector.extract_strided_slice %2 {offsets = [0, 16, 0], sizes = [1, 1, 32], strides = [1, 1, 1]} : vector<1x27x32xf32> to vector<1x1x32xf32>
    %122 = vector.shape_cast %121 : vector<1x1x32xf32> to vector<1x32xf32>
    %123 = vector.broadcast %122 : vector<1x32xf32> to vector<16x32xf32>
    %124 = arith.mulf %120, %123 : vector<16x32xf32>
    %125 = arith.addf %118, %124 : vector<16x32xf32>
    %126 = vector.extract_strided_slice %1 {offsets = [0, 17, 0], sizes = [16, 1, 32], strides = [1, 1, 1]} : vector<16x27x32xf32> to vector<16x1x32xf32>
    %127 = vector.shape_cast %126 : vector<16x1x32xf32> to vector<16x32xf32>
    %128 = vector.extract_strided_slice %2 {offsets = [0, 17, 0], sizes = [1, 1, 32], strides = [1, 1, 1]} : vector<1x27x32xf32> to vector<1x1x32xf32>
    %129 = vector.shape_cast %128 : vector<1x1x32xf32> to vector<1x32xf32>
    %130 = vector.broadcast %129 : vector<1x32xf32> to vector<16x32xf32>
    %131 = arith.mulf %127, %130 : vector<16x32xf32>
    %132 = arith.addf %125, %131 : vector<16x32xf32>
    %133 = vector.extract_strided_slice %1 {offsets = [0, 18, 0], sizes = [16, 1, 32], strides = [1, 1, 1]} : vector<16x27x32xf32> to vector<16x1x32xf32>
    %134 = vector.shape_cast %133 : vector<16x1x32xf32> to vector<16x32xf32>
    %135 = vector.extract_strided_slice %2 {offsets = [0, 18, 0], sizes = [1, 1, 32], strides = [1, 1, 1]} : vector<1x27x32xf32> to vector<1x1x32xf32>
    %136 = vector.shape_cast %135 : vector<1x1x32xf32> to vector<1x32xf32>
    %137 = vector.broadcast %136 : vector<1x32xf32> to vector<16x32xf32>
    %138 = arith.mulf %134, %137 : vector<16x32xf32>
    %139 = arith.addf %132, %138 : vector<16x32xf32>
    %140 = vector.extract_strided_slice %1 {offsets = [0, 19, 0], sizes = [16, 1, 32], strides = [1, 1, 1]} : vector<16x27x32xf32> to vector<16x1x32xf32>
    %141 = vector.shape_cast %140 : vector<16x1x32xf32> to vector<16x32xf32>
    %142 = vector.extract_strided_slice %2 {offsets = [0, 19, 0], sizes = [1, 1, 32], strides = [1, 1, 1]} : vector<1x27x32xf32> to vector<1x1x32xf32>
    %143 = vector.shape_cast %142 : vector<1x1x32xf32> to vector<1x32xf32>
    %144 = vector.broadcast %143 : vector<1x32xf32> to vector<16x32xf32>
    %145 = arith.mulf %141, %144 : vector<16x32xf32>
    %146 = arith.addf %139, %145 : vector<16x32xf32>
    %147 = vector.extract_strided_slice %1 {offsets = [0, 20, 0], sizes = [16, 1, 32], strides = [1, 1, 1]} : vector<16x27x32xf32> to vector<16x1x32xf32>
    %148 = vector.shape_cast %147 : vector<16x1x32xf32> to vector<16x32xf32>
    %149 = vector.extract_strided_slice %2 {offsets = [0, 20, 0], sizes = [1, 1, 32], strides = [1, 1, 1]} : vector<1x27x32xf32> to vector<1x1x32xf32>
    %150 = vector.shape_cast %149 : vector<1x1x32xf32> to vector<1x32xf32>
    %151 = vector.broadcast %150 : vector<1x32xf32> to vector<16x32xf32>
    %152 = arith.mulf %148, %151 : vector<16x32xf32>
    %153 = arith.addf %146, %152 : vector<16x32xf32>
    %154 = vector.extract_strided_slice %1 {offsets = [0, 21, 0], sizes = [16, 1, 32], strides = [1, 1, 1]} : vector<16x27x32xf32> to vector<16x1x32xf32>
    %155 = vector.shape_cast %154 : vector<16x1x32xf32> to vector<16x32xf32>
    %156 = vector.extract_strided_slice %2 {offsets = [0, 21, 0], sizes = [1, 1, 32], strides = [1, 1, 1]} : vector<1x27x32xf32> to vector<1x1x32xf32>
    %157 = vector.shape_cast %156 : vector<1x1x32xf32> to vector<1x32xf32>
    %158 = vector.broadcast %157 : vector<1x32xf32> to vector<16x32xf32>
    %159 = arith.mulf %155, %158 : vector<16x32xf32>
    %160 = arith.addf %153, %159 : vector<16x32xf32>
    %161 = vector.extract_strided_slice %1 {offsets = [0, 22, 0], sizes = [16, 1, 32], strides = [1, 1, 1]} : vector<16x27x32xf32> to vector<16x1x32xf32>
    %162 = vector.shape_cast %161 : vector<16x1x32xf32> to vector<16x32xf32>
    %163 = vector.extract_strided_slice %2 {offsets = [0, 22, 0], sizes = [1, 1, 32], strides = [1, 1, 1]} : vector<1x27x32xf32> to vector<1x1x32xf32>
    %164 = vector.shape_cast %163 : vector<1x1x32xf32> to vector<1x32xf32>
    %165 = vector.broadcast %164 : vector<1x32xf32> to vector<16x32xf32>
    %166 = arith.mulf %162, %165 : vector<16x32xf32>
    %167 = arith.addf %160, %166 : vector<16x32xf32>
    %168 = vector.extract_strided_slice %1 {offsets = [0, 23, 0], sizes = [16, 1, 32], strides = [1, 1, 1]} : vector<16x27x32xf32> to vector<16x1x32xf32>
    %169 = vector.shape_cast %168 : vector<16x1x32xf32> to vector<16x32xf32>
    %170 = vector.extract_strided_slice %2 {offsets = [0, 23, 0], sizes = [1, 1, 32], strides = [1, 1, 1]} : vector<1x27x32xf32> to vector<1x1x32xf32>
    %171 = vector.shape_cast %170 : vector<1x1x32xf32> to vector<1x32xf32>
    %172 = vector.broadcast %171 : vector<1x32xf32> to vector<16x32xf32>
    %173 = arith.mulf %169, %172 : vector<16x32xf32>
    %174 = arith.addf %167, %173 : vector<16x32xf32>
    %175 = vector.extract_strided_slice %1 {offsets = [0, 24, 0], sizes = [16, 1, 32], strides = [1, 1, 1]} : vector<16x27x32xf32> to vector<16x1x32xf32>
    %176 = vector.shape_cast %175 : vector<16x1x32xf32> to vector<16x32xf32>
    %177 = vector.extract_strided_slice %2 {offsets = [0, 24, 0], sizes = [1, 1, 32], strides = [1, 1, 1]} : vector<1x27x32xf32> to vector<1x1x32xf32>
    %178 = vector.shape_cast %177 : vector<1x1x32xf32> to vector<1x32xf32>
    %179 = vector.broadcast %178 : vector<1x32xf32> to vector<16x32xf32>
    %180 = arith.mulf %176, %179 : vector<16x32xf32>
    %181 = arith.addf %174, %180 : vector<16x32xf32>
    %182 = vector.extract_strided_slice %1 {offsets = [0, 25, 0], sizes = [16, 1, 32], strides = [1, 1, 1]} : vector<16x27x32xf32> to vector<16x1x32xf32>
    %183 = vector.shape_cast %182 : vector<16x1x32xf32> to vector<16x32xf32>
    %184 = vector.extract_strided_slice %2 {offsets = [0, 25, 0], sizes = [1, 1, 32], strides = [1, 1, 1]} : vector<1x27x32xf32> to vector<1x1x32xf32>
    %185 = vector.shape_cast %184 : vector<1x1x32xf32> to vector<1x32xf32>
    %186 = vector.broadcast %185 : vector<1x32xf32> to vector<16x32xf32>
    %187 = arith.mulf %183, %186 : vector<16x32xf32>
    %188 = arith.addf %181, %187 : vector<16x32xf32>
    %189 = vector.extract_strided_slice %1 {offsets = [0, 26, 0], sizes = [16, 1, 32], strides = [1, 1, 1]} : vector<16x27x32xf32> to vector<16x1x32xf32>
    %190 = vector.shape_cast %189 : vector<16x1x32xf32> to vector<16x32xf32>
    %191 = vector.extract_strided_slice %2 {offsets = [0, 26, 0], sizes = [1, 1, 32], strides = [1, 1, 1]} : vector<1x27x32xf32> to vector<1x1x32xf32>
    %192 = vector.shape_cast %191 : vector<1x1x32xf32> to vector<1x32xf32>
    %193 = vector.broadcast %192 : vector<1x32xf32> to vector<16x32xf32>
    %194 = arith.mulf %190, %193 : vector<16x32xf32>
    %195 = arith.addf %188, %194 : vector<16x32xf32>
    %c0_8 = arith.constant 0 : index
    %c0_9 = arith.constant 0 : index
    %c0_10 = arith.constant 0 : index
    %196 = vector.load %arg4[%c0_8, %c0_9, %c0_10] : memref<1x16x32xf32, #tpu.memory_space<vmem>>, vector<1x16x32xf32>
    %197 = vector.shape_cast %196 : vector<1x16x32xf32> to vector<16x32xf32>
    %198 = vector.shape_cast %195 : vector<16x32xf32> to vector<1x16x32xf32>
    tpu.vector_store %arg4[%c0_8, %c0_9, %c0_10], %198 {strides = array<i32>} : memref<1x16x32xf32, #tpu.memory_space<vmem>>, vector<1x16x32xf32>,
    return
  }
  func.func @transform_0(%arg0: i32) -> (i32, i32, i32, i32) {
    %c0_i32 = arith.constant 0 : i32
    %c0_i32_0 = arith.constant 0 : i32
    %c0_i32_1 = arith.constant 0 : i32
    %c0_i32_2 = arith.constant 0 : i32
    return %arg0, %c0_i32, %c0_i32_0, %c0_i32_1 : i32, i32, i32, i32
  }
  func.func @transform_1(%arg0: i32) -> (i32, i32, i32) {
    %c0_i32 = arith.constant 0 : i32
    %c0_i32_0 = arith.constant 0 : i32
    %c0_i32_1 = arith.constant 0 : i32
    %c0_i32_2 = arith.constant 0 : i32
    return %c0_i32, %c0_i32_0, %c0_i32_1 : i32, i32, i32
  }
  func.func @transform_2(%arg0: i32) -> (i32, i32) {
    %c0_i32 = arith.constant 0 : i32
    %c0_i32_0 = arith.constant 0 : i32
    %c0_i32_1 = arith.constant 0 : i32
    return %c0_i32, %c0_i32_0 : i32, i32
  }
  func.func @transform_3(%arg0: i32) -> (i32, i32, i32) {
    %c0_i32 = arith.constant 0 : i32
    %c0_i32_0 = arith.constant 0 : i32
    %c0_i32_1 = arith.constant 0 : i32
    return %arg0, %c0_i32, %c0_i32_0 : i32, i32, i32
  }
}

</mosaic_0001>

<bundles_post_ra>
// kernel: tpu_custom_call.1
= control target key start
LH: loop header
LB: loop body
LE: loop exit
PB: predicated region body
PF: predicated region fallthrough
CT: control target
= control target key end

     0   :  { %8 = vsyncpa [#allocation3], 0  ;;  %s3932_s0 = inlined_call_operand.vmem [shape: f32[2,16,27,32], index: 0, kind: input, shape index: {}]   ;;  %s3933_s1 = inlined_call_operand.vmem [shape: f32[1,27,32], index: 1, kind: input, shape index: {}]   ;;  %s3934_s2 = inlined_call_operand.vmem [shape: f32[1,32], index: 2, kind: input, shape index: {}]   ;;  %s3935_s3 = inlined_call_operand.hbm [shape: f32[2,16,32], index: 3, kind: output, shape index: {}]  }
   0x1   :  { %10 = vsyncpa [#allocation3 + $0x1], 0  ;;  %s2310_s12 = smov 0   ;;  %s2312_s13 = smov 0  }
   0x2   :  { %s2314_s14 = smov 0   ;;  %s2316_s15 = smov 0  }
   0x3 LB: > { %s2331_s16 = sadd.s32 4294967295, %s2285_s15   ;;  %s2167_s17 = sadd.s32 4294967294, %s2285_s15   ;;  %s2285_s15 = sphi %s2316_s15, %s3945_s15   ;;  %s2281_s14 = sphi %s2314_s14, %s3944_s14   ;;  %s2277_s13 = sphi %s2312_s13, %s3943_s13   ;;  %s2273_s12 = sphi %s2310_s12, %s3942_s12  }
   0x4   : > { %s2335_s18 = sadd.s32 1, %s2285_s15   ;;  %s91_s19 = sadd.s32 1, %s2281_s14 }
   0x5   : > { %s88_s20 = ssub.s32 %s2285_s15, %s2335_s18  ;;  %p101_p0 = scmp.ne.s32.totalorder %s2281_s14, %s2277_s13 }
   0x6   : > { %p89_p1 = scmp.eq.s32.totalorder %s88_s20, 0  ;;  %p102_p2 = scmp.eq.s32.totalorder %s2331_s16, 1 }
   0x7   : > { %p107_p3 = scmp.ne.s32.totalorder %s2277_s13, %s2273_s12  ;;  %p108_p4 = scmp.eq.s32.totalorder %s2167_s17, 1 }
   0x8   : > { %s2346_s21 = scalar_select %p89_p1, %s2281_s14, %s91_s19  }
   0x9   : > { %p2348_p5 = por %p102_p2, %p101_p0  ;;  %p2352_p6 = por %p108_p4, %p107_p3 }
   0xa   : > { %p2170_p7 = scmp.ge.s32.totalorder %s2285_s15, 1  ;;  %p140_p8 = scmp.lt.s32.totalorder %s2285_s15, 3 }
   0xc   : > { %p141_p9 = pnand %p2170_p7, %p140_p8 }
   0xe   : > { %144 = sbr.rel (%p141_p9) target bundleno = 363 (0x16b), region = 32 }
  0x15   : > { %p164_p10 = scmp.lt.s32.totalorder %s2331_s16, 1  ;;  %v245_v0 = vlaneseq  ;;  %v233_v2 = vld [vmem:[%s3933_s1] sm:$0xff]  ;;  %vm282_vm0 = vcmask 1041409   ;;  %vm285_vm1 = vcmask 1042434   ;;  %vm288_vm2 = vcmask 1043459   ;;  %s161_s17 = sand.u32 1, %s2277_s13  }
  0x16   : > { %vm291_vm3 = vcmask 1044484   ;;  %vm294_vm4 = vcmask 1045509   ;;  %vm297_vm5 = vcmask 1046534   ;;  %vm300_vm6 = vcmask 1047559   ;;  %s2171_s19 = sshll.u32 %s161_s17, 4  ;;  %s2181_s20 = sshll.u32 %s2331_s16, 8 }
  0x17   : > { %v246_v1 = vshrl.u32 %v245_v0, 7  ;;  %s165_s24 = scalar_select %p164_p10, %s2331_s16, 1  ;;  %vm2088_vm7 = vcmask 261120  }
  0x18   : > { %s3885_s28 = scalar_lea.hbm %s3935_s3, %s2181_s20  ;;  %s3891_s16 = scalar_lea.sflag [#allocation3], %s161_s17 }
  0x19   : > { %v2363_v3 = vsub.s32 0, %v246_v1  ;;  %v2365_v4 = vsub.s32 1, %v246_v1  ;;  %v2367_v5 = vsub.s32 2, %v246_v1  ;;  %v2369_v6 = vsub.s32 3, %v246_v1  ;;  %s2180_s27 = sshll.u32 %s165_s24, 9  ;;  %s163_s24 = scalar_lea.vmem [#allocation2], %s2171_s19 }
  0x1a   : > { %v2371_v7 = vsub.s32 4, %v246_v1  ;;  %v2373_v8 = vsub.s32 5, %v246_v1  ;;  %v2375_v9 = vsub.s32 6, %v246_v1  ;;  %v2377_v10 = vsub.s32 7, %v246_v1  ;;  %s2382_s30 = scalar_lea.vmem %s3932_s0, %s2180_s27  ;;  %s2105_s25 = sshll.u32 %s163_s24, 4  ;;  %s3887_s25 = int_to_ptr.vmem [resolvable:$true] %s2105_s25 }
  0x1b   : > { %v2385_v11 = vrot.slane %v233_v2, %v2363_v3  ;;  %v2388_v12 = vrot.slane %v233_v2, %v2365_v4  ;;  %v2391_v13 = vrot.slane %v233_v2, %v2367_v5  ;;  %v2394_v14 = vld [vmem:[%s2382_s30] sm:$0xff]  ;;  %v2397_v15 = vrot.slane %v233_v2, %v2369_v6  ;;  %s2223_s29 = scalar_lea.vmem %s3887_s25, 256 }
  0x1c   : > { %3940 = vst [vmem:[#allocation5_spill] sm:$0xff] %v2377_v10  ;;  %v2400_v16 = vld [vmem:[%s2382_s30 + $0x20] sm:$0xff]  ;;  %v2405_v18 = vrot.slane %v233_v2, %v2371_v7  ;;  %v2408_v19 = vrot.slane %v233_v2, %v2373_v8  ;;  %v2411_v20 = vrot.slane %v233_v2, %v2375_v9  ;;  %v2423_v25 = vrot.slane %v233_v2, %v2377_v10  ;;  %p2224_p11 = scmp.ne.s32.totalorder %s3887_s25, %s2223_s29 }
  0x1d   : > { %v324_v17 = vmul.f32 %v2388_v12, %v2394_v14  ;;  %v2414_v21 = vld [vmem:[%s2382_s30 + $0x40] sm:$0xff]  ;;  %v249_v22 = vmul.f32 %v2385_v11, %v2394_v14  ;;  %v250_v23 = vmul.f32 %v2385_v11, %v2400_v16  ;;  %v325_v24 = vmul.f32 %v2388_v12, %v2400_v16 }
  0x1e   : > { %v251_v26 = vmul.f32 %v2385_v11, %v2414_v21  ;;  %v326_v27 = vmul.f32 %v2388_v12, %v2414_v21  ;;  %v2431_v29 = vmul.f32 %v2391_v13, %v2394_v14  ;;  %v2434_v30 = vld [vmem:[%s2382_s30 + $0x60] sm:$0xff]  ;;  %v2438_v32 = vmul.f32 %v2391_v13, %v2400_v16  ;;  %p2225_p12 = pnand %p2224_p11, %p2348_p5 }
  0x1f   : > { %v356_v28 = vrot.slane %v324_v17, 1  ;;  %v281_v31 = vrot.slane %v250_v23, 7  ;;  %v2442_v33 = vmul.f32 %v2397_v15, %v2394_v14  ;;  %v2446_v34 = vmul.f32 %v2397_v15, %v2400_v16  ;;  %v2449_v35 = vld [vmem:[%s2382_s30 + $0x80] sm:$0xff] }
  0x20   : > { %v252_v36 = vmul.f32 %v2385_v11, %v2434_v30  ;;  %v284_v37 = vrot.slane %v251_v26, 6  ;;  %v327_v38 = vmul.f32 %v2388_v12, %v2434_v30  ;;  %v2457_v40 = vld [vmem:[%s2382_s30 + $0xa0] sm:$0xff]  ;;  %v253_v41 = vmul.f32 %v2385_v11, %v2449_v35  ;;  %p2226_p13 = pneg %p2225_p12 }
  0x21   : > { %v357_v39 = vsel %vm282_vm0, %v325_v24, %v356_v28  ;;  %v283_v42 = vsel %vm282_vm0, %v281_v31, %v249_v22  ;;  %v328_v43 = vmul.f32 %v2388_v12, %v2449_v35  ;;  %v358_v44 = vrot.slane %v326_v27, 7  ;;  %v2470_v49 = vld [vmem:[%s2382_s30 + $0xc0] sm:$0xff] }
  0x22   : > { %v254_v45 = vmul.f32 %v2385_v11, %v2457_v40  ;;  %v286_v46 = vsel %vm285_vm1, %v284_v37, %v283_v42  ;;  %v287_v47 = vrot.slane %v252_v36, 5  ;;  %v329_v48 = vmul.f32 %v2388_v12, %v2457_v40  ;;  %v2474_v54 = vld [vmem:[%s2382_s30 + $0xe0] sm:$0xff] }
  0x23   : > { %v290_v50 = vrot.slane %v253_v41, 4  ;;  %v359_v51 = vsel %vm285_vm1, %v358_v44, %v357_v39  ;;  %v360_v52 = vrot.slane %v327_v38, 6  ;;  %v362_v53 = vrot.slane %v328_v43, 5  ;;  %v2482_v59 = vld [vmem:[%s2382_s30 + $0x100] sm:$0xff] }
  0x24   : > { %v255_v55 = vmul.f32 %v2385_v11, %v2470_v49  ;;  %v289_v56 = vsel %vm288_vm2, %v287_v47, %v286_v46  ;;  %v293_v57 = vrot.slane %v254_v45, 3  ;;  %v330_v58 = vmul.f32 %v2388_v12, %v2470_v49  ;;  %v2498_v22 = vld [vmem:[%s2382_s30 + $0x120] sm:$0xff] }
  0x25   : > { %v256_v60 = vmul.f32 %v2385_v11, %v2474_v54  ;;  %v292_v61 = vsel %vm291_vm3, %v290_v50, %v289_v56  ;;  %v361_v62 = vsel %vm288_vm2, %v360_v52, %v359_v51  ;;  %v2490_v63 = vmul.f32 %v2391_v13, %v2414_v21  ;;  %v2502_v28 = vld [vmem:[%s2382_s30 + $0x140] sm:$0xff] }
  0x26   : > { %v295_v0 = vsel %vm294_vm4, %v293_v57, %v292_v61  ;;  %v296_v1 = vrot.slane %v255_v55, 2  ;;  %v331_v2 = vmul.f32 %v2388_v12, %v2474_v54  ;;  %v332_v17 = vmul.f32 %v2388_v12, %v2482_v59  ;;  %v2511_v39 = vld [vmem:[%s2382_s30 + $0x160] sm:$0xff] }
  0x27   : > { %v299_v23 = vrot.slane %v256_v60, 1  ;;  %v363_v24 = vsel %vm291_vm3, %v362_v53, %v361_v62  ;;  %v364_v26 = vrot.slane %v329_v48, 4  ;;  %v366_v27 = vrot.slane %v330_v58, 3  ;;  %v2524_v50 = vld [vmem:[%s2382_s30 + $0x180] sm:$0xff] }
  0x28   : > { %v257_v31 = vmul.f32 %v2385_v11, %v2482_v59  ;;  %v258_v36 = vmul.f32 %v2385_v11, %v2498_v22  ;;  %v298_v37 = vsel %vm297_vm5, %v296_v1, %v295_v0  ;;  %v424_v38 = vrot.slane %v2431_v29, 2  ;;  %v2530_v56 = vld [vmem:[%s2382_s30 + $0x1a0] sm:$0xff] }
  0x29   : > { %v259_v41 = vmul.f32 %v2385_v11, %v2502_v28  ;;  %v333_v42 = vmul.f32 %v2388_v12, %v2498_v22  ;;  %v334_v43 = vmul.f32 %v2388_v12, %v2502_v28  ;;  %v365_v44 = vsel %vm294_vm4, %v364_v26, %v363_v24  ;;  %v2538_v62 = vld [vmem:[%s2382_s30 + $0x1c0] sm:$0xff] }
  0x2a   : > { %v260_v45 = vmul.f32 %v2385_v11, %v2511_v39  ;;  %v301_v46 = vsel %vm300_vm6, %v299_v23, %v298_v37  ;;  %v302_v47 = vrot.slane %v258_v36, 7  ;;  %v368_v48 = vrot.slane %v331_v2, 2 }
  0x2b   : > { %v304_v51 = vrot.slane %v259_v41, 6  ;;  %v335_v52 = vmul.f32 %v2388_v12, %v2511_v39  ;;  %v367_v53 = vsel %vm297_vm5, %v366_v27, %v365_v44  ;;  %v370_v55 = vrot.slane %v332_v17, 1 }
  0x2c   : > { %v261_v57 = vmul.f32 %v2385_v11, %v2524_v50  ;;  %v303_v58 = vsel %vm282_vm0, %v302_v47, %v257_v31  ;;  %v306_v60 = vrot.slane %v260_v45, 5  ;;  %v336_v61 = vmul.f32 %v2388_v12, %v2524_v50  ;;  %v2551_v31 = vld [vmem:[%s2382_s30 + $0x1e0] sm:$0xff] }
  0x2d   : > { %v262_v0 = vmul.f32 %v2385_v11, %v2530_v56  ;;  %v305_v1 = vsel %vm285_vm1, %v304_v51, %v303_v58  ;;  %v337_v2 = vmul.f32 %v2388_v12, %v2530_v56  ;;  %v372_v17 = vrot.slane %v334_v43, 7  ;;  %v2174_v43 = vld [vmem:[%s3934_s2] ss:$0 sm:$0xff] }
  0x2e   : > { %v263_v23 = vmul.f32 %v2385_v11, %v2538_v62  ;;  %v307_v24 = vsel %vm288_vm2, %v306_v60, %v305_v1  ;;  %v308_v26 = vrot.slane %v261_v57, 4  ;;  %v338_v27 = vmul.f32 %v2388_v12, %v2538_v62 }
  0x2f   : > { %v310_v36 = vrot.slane %v262_v0, 3  ;;  %v371_v37 = vsel %vm282_vm0, %v333_v42, %v370_v55  ;;  %v374_v41 = vrot.slane %v335_v52, 6  ;;  %v376_v44 = vrot.slane %v336_v61, 5 }
  0x30   : > { %v264_v45 = vmul.f32 %v2385_v11, %v2551_v31  ;;  %v309_v47 = vsel %vm291_vm3, %v308_v26, %v307_v24  ;;  %v312_v51 = vrot.slane %v263_v23, 2  ;;  %v339_v57 = vmul.f32 %v2388_v12, %v2551_v31 }
  0x31   : > { %v311_v58 = vsel %vm294_vm4, %v310_v36, %v309_v47  ;;  %v373_v60 = vsel %vm285_vm1, %v372_v17, %v371_v37  ;;  %v378_v42 = vrot.slane %v337_v2, 4  ;;  %v380_v52 = vrot.slane %v338_v27, 3 }
  0x32   : > { %v313_v55 = vsel %vm297_vm5, %v312_v51, %v311_v58  ;;  %v314_v61 = vrot.slane %v264_v45, 1  ;;  %v375_v0 = vsel %vm288_vm2, %v374_v41, %v373_v60  ;;  %v425_v1 = vrot.slane %v2438_v32, 1 }
  0x33   : > { %v318_v11 = vadd.f32 %v2174_v43, %v301_v46  ;;  %v369_v24 = vsel %vm300_vm6, %v368_v48, %v367_v53  ;;  %v377_v23 = vsel %vm291_vm3, %v376_v44, %v375_v0  ;;  %v382_v26 = vrot.slane %v339_v57, 2 }
  0x34   : > { %v315_v12 = vsel %vm300_vm6, %v314_v61, %v313_v55  ;;  %v379_v36 = vsel %vm294_vm4, %v378_v42, %v377_v23  ;;  %v395_v2 = vmul.f32 %v2391_v13, %v2434_v30  ;;  %v396_v17 = vmul.f32 %v2391_v13, %v2449_v35 }
  0x35   : > { %v319_v27 = vadd.f32 %v2174_v43, %v315_v12  ;;  %v381_v37 = vsel %vm297_vm5, %v380_v52, %v379_v36  ;;  %v397_v32 = vmul.f32 %v2391_v13, %v2457_v40  ;;  %v398_v46 = vmul.f32 %v2391_v13, %v2470_v49 }
  0x36   : > { %v399_v48 = vmul.f32 %v2391_v13, %v2474_v54  ;;  %v400_v53 = vmul.f32 %v2391_v13, %v2482_v59  ;;  %v401_v41 = vmul.f32 %v2391_v13, %v2498_v22  ;;  %v403_v44 = vmul.f32 %v2391_v13, %v2511_v39 }
  0x37   : > { %v383_v43 = vsel %vm300_vm6, %v382_v26, %v381_v37  ;;  %v402_v45 = vmul.f32 %v2391_v13, %v2502_v28  ;;  %v404_v47 = vmul.f32 %v2391_v13, %v2524_v50  ;;  %v405_v51 = vmul.f32 %v2391_v13, %v2530_v56 }
  0x38   : > { %v406_v57 = vmul.f32 %v2391_v13, %v2538_v62  ;;  %v426_v58 = vsel %vm282_vm0, %v425_v1, %v424_v38  ;;  %v428_v60 = vrot.slane %v395_v2, 7  ;;  %v430_v42 = vrot.slane %v396_v17, 6 }
  0x39   : > { %v407_v52 = vmul.f32 %v2391_v13, %v2551_v31  ;;  %v427_v55 = vsel %vm285_vm1, %v2490_v63, %v426_v58  ;;  %v432_v61 = vrot.slane %v397_v32, 5  ;;  %v434_v0 = vrot.slane %v398_v46, 4 }
  0x3a   : > { %v429_v23 = vsel %vm288_vm2, %v428_v60, %v427_v55  ;;  %v438_v26 = vrot.slane %v400_v53, 2  ;;  %v439_v12 = vrot.slane %v401_v41, 1  ;;  %v442_v36 = vrot.slane %v403_v44, 7 }
  0x3b   : > { %v431_v37 = vsel %vm291_vm3, %v430_v42, %v429_v23  ;;  %v436_v29 = vrot.slane %v399_v48, 3  ;;  %v444_v10 = vrot.slane %v404_v47, 6  ;;  %v462_v38 = vmul.f32 %v2397_v15, %v2414_v21 }
  0x3c   : > { %v386_v1 = vadd.f32 %v369_v24, %v318_v11  ;;  %v433_v13 = vsel %vm294_vm4, %v432_v61, %v431_v37  ;;  %v440_v2 = vsel %vm282_vm0, %v439_v12, %v438_v26  ;;  %v446_v63 = vrot.slane %v405_v51, 5 }
  0x3d   : > { %v387_v17 = vadd.f32 %v383_v43, %v319_v27  ;;  %v435_v32 = vsel %vm297_vm5, %v434_v0, %v433_v13  ;;  %v441_v46 = vsel %vm285_vm1, %v402_v45, %v440_v2  ;;  %v448_v53 = vrot.slane %v406_v57, 4 }
  0x3e   : > { %v443_v41 = vsel %vm288_vm2, %v442_v36, %v441_v46  ;;  %v450_v44 = vrot.slane %v407_v52, 3  ;;  %v463_v48 = vmul.f32 %v2397_v15, %v2434_v30  ;;  %v464_v11 = vmul.f32 %v2397_v15, %v2449_v35 }
  0x3f   : > { %v437_v24 = vsel %vm300_vm6, %v436_v29, %v435_v32  ;;  %v445_v47 = vsel %vm291_vm3, %v444_v10, %v443_v41  ;;  %v465_v27 = vmul.f32 %v2397_v15, %v2457_v40  ;;  %v466_v43 = vmul.f32 %v2397_v15, %v2470_v49 }
  0x40   : > { %v447_v45 = vsel %vm294_vm4, %v446_v63, %v445_v47  ;;  %v467_v51 = vmul.f32 %v2397_v15, %v2474_v54  ;;  %v468_v57 = vmul.f32 %v2397_v15, %v2482_v59  ;;  %v469_v58 = vmul.f32 %v2397_v15, %v2498_v22 }
  0x41   : > { %v449_v60 = vsel %vm297_vm5, %v448_v53, %v447_v45  ;;  %v470_v10 = vmul.f32 %v2397_v15, %v2502_v28  ;;  %v471_v42 = vmul.f32 %v2397_v15, %v2511_v39  ;;  %v472_v52 = vmul.f32 %v2397_v15, %v2524_v50 }
  0x42   : > { %v473_v55 = vmul.f32 %v2397_v15, %v2530_v56  ;;  %v492_v61 = vrot.slane %v2442_v33, 3  ;;  %v493_v0 = vrot.slane %v2446_v34, 2  ;;  %v495_v23 = vrot.slane %v462_v38, 1 }
  0x43   : > { %v451_v26 = vsel %vm300_vm6, %v450_v44, %v449_v60  ;;  %v474_v12 = vmul.f32 %v2397_v15, %v2538_v62  ;;  %v475_v36 = vmul.f32 %v2397_v15, %v2551_v31  ;;  %v498_v37 = vrot.slane %v464_v11, 7 }
  0x44   : > { %v494_v29 = vsel %vm282_vm0, %v493_v0, %v492_v61  ;;  %v500_v13 = vrot.slane %v465_v27, 6  ;;  %v506_v2 = vrot.slane %v468_v57, 3  ;;  %v507_v63 = vrot.slane %v469_v58, 2 }
  0x45   : > { %v496_v32 = vsel %vm285_vm1, %v495_v23, %v494_v29  ;;  %v502_v33 = vrot.slane %v466_v43, 5  ;;  %v509_v46 = vrot.slane %v470_v10, 1  ;;  %v512_v34 = vrot.slane %v472_v52, 7 }
  0x46   : > { %v497_v38 = vsel %vm288_vm2, %v463_v48, %v496_v32  ;;  %v504_v53 = vrot.slane %v467_v51, 4  ;;  %v508_v41 = vsel %vm282_vm0, %v507_v63, %v506_v2  ;;  %v514_v44 = vrot.slane %v473_v55, 6 }
  0x47   : > { %v454_v47 = vadd.f32 %v437_v24, %v386_v1  ;;  %v499_v15 = vsel %vm291_vm3, %v498_v37, %v497_v38  ;;  %v510_v11 = vsel %vm285_vm1, %v509_v46, %v508_v41  ;;  %v516_v45 = vrot.slane %v474_v12, 5 }
  0x48   : > { %v455_v27 = vadd.f32 %v451_v26, %v387_v17  ;;  %v501_v57 = vsel %vm294_vm4, %v500_v13, %v499_v15  ;;  %v511_v58 = vsel %vm288_vm2, %v471_v42, %v510_v11  ;;  %v518_v43 = vrot.slane %v475_v36, 4 }
  0x49   : > { %v503_v60 = vsel %vm297_vm5, %v502_v33, %v501_v57  ;;  %v513_v48 = vsel %vm291_vm3, %v512_v34, %v511_v58  ;;  %v528_v51 = vmul.f32 %v2405_v18, %v2394_v14  ;;  %v529_v1 = vmul.f32 %v2405_v18, %v2400_v16 }
  0x4a   : > { %v505_v24 = vsel %vm300_vm6, %v504_v53, %v503_v60  ;;  %v515_v10 = vsel %vm294_vm4, %v514_v44, %v513_v48  ;;  %v530_v17 = vmul.f32 %v2405_v18, %v2414_v21  ;;  %v531_v42 = vmul.f32 %v2405_v18, %v2434_v30 }
  0x4b   : > { %v517_v52 = vsel %vm297_vm5, %v516_v45, %v515_v10  ;;  %v532_v55 = vmul.f32 %v2405_v18, %v2449_v35  ;;  %v533_v61 = vmul.f32 %v2405_v18, %v2457_v40  ;;  %v536_v0 = vmul.f32 %v2405_v18, %v2482_v59 }
  0x4c   : > { %v534_v23 = vmul.f32 %v2405_v18, %v2470_v49  ;;  %v537_v26 = vmul.f32 %v2405_v18, %v2498_v22  ;;  %v538_v12 = vmul.f32 %v2405_v18, %v2502_v28  ;;  %v539_v36 = vmul.f32 %v2405_v18, %v2511_v39 }
  0x4d   : > { %v519_v37 = vsel %vm300_vm6, %v518_v43, %v517_v52  ;;  %v2682_v29 = vadd.f32 %v505_v24, %v454_v47  ;;  %v535_v13 = vmul.f32 %v2405_v18, %v2474_v54  ;;  %v541_v2 = vmul.f32 %v2405_v18, %v2530_v56 }
  0x4e   : > { %v560_v63 = vrot.slane %v528_v51, 4  ;;  %v561_v32 = vrot.slane %v529_v1, 3  ;;  %v563_v33 = vrot.slane %v530_v17, 2  ;;  %v565_v46 = vrot.slane %v531_v42, 1 }
  0x4f   : > { %v542_v34 = vmul.f32 %v2405_v18, %v2538_v62  ;;  %v543_v38 = vmul.f32 %v2405_v18, %v2551_v31  ;;  %v568_v53 = vrot.slane %v533_v61, 7  ;;  %v574_v41 = vrot.slane %v536_v0, 4 }
  0x50   : > { %v562_v44 = vsel %vm282_vm0, %v561_v32, %v560_v63  ;;  %v575_v47 = vrot.slane %v537_v26, 3  ;;  %v577_v15 = vrot.slane %v538_v12, 2  ;;  %v579_v11 = vrot.slane %v539_v36, 1 }
  0x51   : > { %v523_v45 = vadd.f32 %v519_v37, %v455_v27  ;;  %v540_v57 = vmul.f32 %v2405_v18, %v2524_v50  ;;  %v564_v58 = vsel %vm285_vm1, %v563_v33, %v562_v44  ;;  %v570_v43 = vrot.slane %v534_v23, 6 }
  0x52   : > { %v566_v60 = vsel %vm288_vm2, %v565_v46, %v564_v58  ;;  %v572_v48 = vrot.slane %v535_v13, 5  ;;  %v576_v51 = vsel %vm282_vm0, %v575_v47, %v574_v41  ;;  %v582_v1 = vrot.slane %v541_v2, 7 }
  0x53   : > { %v567_v24 = vsel %vm291_vm3, %v532_v55, %v566_v60  ;;  %v578_v10 = vsel %vm285_vm1, %v577_v15, %v576_v51  ;;  %v584_v17 = vrot.slane %v542_v34, 6  ;;  %v586_v42 = vrot.slane %v543_v38, 5 }
  0x54   : > { %v569_v27 = vsel %vm294_vm4, %v568_v53, %v567_v24  ;;  %v580_v52 = vsel %vm288_vm2, %v579_v11, %v578_v10  ;;  %v596_v18 = vmul.f32 %v2408_v19, %v2394_v14  ;;  %v597_v61 = vmul.f32 %v2408_v19, %v2400_v16 }
  0x55   : > { %v571_v0 = vsel %vm297_vm5, %v570_v43, %v569_v27  ;;  %v581_v23 = vsel %vm291_vm3, %v540_v57, %v580_v52  ;;  %v598_v55 = vmul.f32 %v2408_v19, %v2414_v21  ;;  %v599_v26 = vmul.f32 %v2408_v19, %v2434_v30 }
  0x56   : > { %v583_v12 = vsel %vm294_vm4, %v582_v1, %v581_v23  ;;  %v600_v36 = vmul.f32 %v2408_v19, %v2449_v35  ;;  %v601_v37 = vmul.f32 %v2408_v19, %v2457_v40  ;;  %v602_v13 = vmul.f32 %v2408_v19, %v2470_v49 }
  0x57   : > { %v585_v2 = vsel %vm297_vm5, %v584_v17, %v583_v12  ;;  %v603_v63 = vmul.f32 %v2408_v19, %v2474_v54  ;;  %v604_v32 = vmul.f32 %v2408_v19, %v2482_v59  ;;  %v605_v33 = vmul.f32 %v2408_v19, %v2498_v22 }
  0x58   : > { %v573_v46 = vsel %vm300_vm6, %v572_v48, %v571_v0  ;;  %v606_v34 = vmul.f32 %v2408_v19, %v2502_v28  ;;  %v607_v38 = vmul.f32 %v2408_v19, %v2511_v39  ;;  %v608_v53 = vmul.f32 %v2408_v19, %v2524_v50 }
  0x59   : > { %v587_v41 = vsel %vm300_vm6, %v586_v42, %v585_v2  ;;  %v610_v44 = vmul.f32 %v2408_v19, %v2538_v62  ;;  %v628_v47 = vrot.slane %v596_v18, 5  ;;  %v629_v15 = vrot.slane %v597_v61, 4 }
  0x5a   : > { %v611_v11 = vmul.f32 %v2408_v19, %v2551_v31  ;;  %v631_v57 = vrot.slane %v598_v55, 3  ;;  %v633_v58 = vrot.slane %v599_v26, 2  ;;  %v635_v43 = vrot.slane %v600_v36, 1 }
  0x5b   : > { %v630_v60 = vsel %vm282_vm0, %v629_v15, %v628_v47  ;;  %v638_v48 = vrot.slane %v602_v13, 7  ;;  %v642_v51 = vrot.slane %v604_v32, 5  ;;  %v643_v1 = vrot.slane %v605_v33, 4 }
  0x5c   : > { %v632_v24 = vsel %vm285_vm1, %v631_v57, %v630_v60  ;;  %v645_v10 = vrot.slane %v606_v34, 3  ;;  %v647_v17 = vrot.slane %v607_v38, 2  ;;  %v649_v42 = vrot.slane %v608_v53, 1 }
  0x5d   : > { %v590_v27 = vadd.f32 %v573_v46, %v2682_v29  ;;  %v609_v52 = vmul.f32 %v2408_v19, %v2530_v56  ;;  %v634_v18 = vsel %vm288_vm2, %v633_v58, %v632_v24  ;;  %v644_v61 = vsel %vm282_vm0, %v643_v1, %v642_v51 }
  0x5e   : > { %v636_v0 = vsel %vm291_vm3, %v635_v43, %v634_v18  ;;  %v640_v23 = vrot.slane %v603_v63, 6  ;;  %v646_v55 = vsel %vm285_vm1, %v645_v10, %v644_v61  ;;  %v652_v26 = vrot.slane %v610_v44, 7 }
  0x5f   : > { %v591_v12 = vadd.f32 %v587_v41, %v523_v45  ;;  %v637_v36 = vsel %vm294_vm4, %v601_v37, %v636_v0  ;;  %v648_v13 = vsel %vm288_vm2, %v647_v17, %v646_v55  ;;  %v654_v2 = vrot.slane %v611_v11, 6 }
  0x60   : > { %v639_v29 = vsel %vm297_vm5, %v638_v48, %v637_v36  ;;  %v650_v19 = vsel %vm291_vm3, %v649_v42, %v648_v13  ;;  %v664_v32 = vmul.f32 %v2411_v20, %v2394_v14  ;;  %v665_v33 = vmul.f32 %v2411_v20, %v2400_v16 }
  0x61   : > { %v651_v63 = vsel %vm294_vm4, %v609_v52, %v650_v19  ;;  %v666_v45 = vmul.f32 %v2411_v20, %v2414_v21  ;;  %v667_v37 = vmul.f32 %v2411_v20, %v2434_v30  ;;  %v668_v46 = vmul.f32 %v2411_v20, %v2449_v35 }
  0x62   : > { %v641_v34 = vsel %vm300_vm6, %v640_v23, %v639_v29  ;;  %v653_v38 = vsel %vm297_vm5, %v652_v26, %v651_v63  ;;  %v669_v53 = vmul.f32 %v2411_v20, %v2457_v40  ;;  %v672_v41 = vmul.f32 %v2411_v20, %v2482_v59 }
  0x63   : > { %v670_v44 = vmul.f32 %v2411_v20, %v2470_v49  ;;  %v673_v47 = vmul.f32 %v2411_v20, %v2498_v22  ;;  %v674_v15 = vmul.f32 %v2411_v20, %v2502_v28  ;;  %v675_v11 = vmul.f32 %v2411_v20, %v2511_v39 }
  0x64   : > { %v655_v57 = vsel %vm300_vm6, %v654_v2, %v653_v38  ;;  %v671_v58 = vmul.f32 %v2411_v20, %v2474_v54  ;;  %v676_v43 = vmul.f32 %v2411_v20, %v2524_v50  ;;  %v677_v60 = vmul.f32 %v2411_v20, %v2530_v56 }
  0x65   : > { %v696_v48 = vrot.slane %v664_v32, 6  ;;  %v697_v51 = vrot.slane %v665_v33, 5  ;;  %v699_v1 = vrot.slane %v666_v45, 4  ;;  %v701_v24 = vrot.slane %v667_v37, 3 }
  0x66   : > { %v679_v10 = vmul.f32 %v2411_v20, %v2551_v31  ;;  %v703_v17 = vrot.slane %v668_v46, 2  ;;  %v705_v42 = vrot.slane %v669_v53, 1  ;;  %v710_v52 = vrot.slane %v672_v41, 6 }
  0x67   : > { %v698_v18 = vsel %vm282_vm0, %v697_v51, %v696_v48  ;;  %v711_v61 = vrot.slane %v673_v47, 5  ;;  %v713_v0 = vrot.slane %v674_v15, 4  ;;  %v715_v23 = vrot.slane %v675_v11, 3 }
  0x68   : > { %v658_v55 = vadd.f32 %v641_v34, %v590_v27  ;;  %v2786_v26 = vadd.f32 %v655_v57, %v591_v12  ;;  %v700_v36 = vsel %vm285_vm1, %v699_v1, %v698_v18  ;;  %v717_v13 = vrot.slane %v676_v43, 2 }
  0x69   : > { %v678_v2 = vmul.f32 %v2411_v20, %v2538_v62  ;;  %v702_v29 = vsel %vm288_vm2, %v701_v24, %v700_v36  ;;  %v712_v19 = vsel %vm282_vm0, %v711_v61, %v710_v52  ;;  %v719_v32 = vrot.slane %v677_v60, 1 }
  0x6a   : > { %v704_v33 = vsel %vm291_vm3, %v703_v17, %v702_v29  ;;  %v708_v63 = vrot.slane %v671_v58, 7  ;;  %v714_v45 = vsel %vm285_vm1, %v713_v0, %v712_v19  ;;  %v722_v37 = vrot.slane %v679_v10, 7  ;;  %v2845_v0 = vld [vmem:[%s2382_s30 + $0x8] sm:$0xff] }
  0x6b   : > { %v706_v27 = vsel %vm294_vm4, %v705_v42, %v704_v33  ;;  %v716_v12 = vsel %vm288_vm2, %v715_v23, %v714_v45  ;;  %v732_v46 = vmul.f32 %v2423_v25, %v2394_v14  ;;  %v733_v20 = vmul.f32 %v2423_v25, %v2400_v16  ;;  %v2848_v23 = vld [vmem:[%s2382_s30 + $0x28] sm:$0xff] }
  0x6c   : > { %v707_v34 = vsel %vm297_vm5, %v670_v44, %v706_v27  ;;  %v718_v38 = vsel %vm291_vm3, %v717_v13, %v716_v12  ;;  %v734_v53 = vmul.f32 %v2423_v25, %v2414_v21  ;;  %v735_v41 = vmul.f32 %v2423_v25, %v2434_v30  ;;  %v2855_v19 = vld [vmem:[%s2382_s30 + $0x48] sm:$0xff] }
  0x6d   : > { %v720_v47 = vsel %vm294_vm4, %v719_v32, %v718_v38  ;;  %v736_v15 = vmul.f32 %v2423_v25, %v2449_v35  ;;  %v737_v14 = vmul.f32 %v2423_v25, %v2457_v40  ;;  %v738_v16 = vmul.f32 %v2423_v25, %v2470_v49  ;;  %v2858_v32 = vld [vmem:[%s2382_s30 + $0x68] sm:$0xff] }
  0x6e   : > { %v709_v44 = vsel %vm300_vm6, %v708_v63, %v707_v34  ;;  %v2817_v11 = vmul.f32 %v2423_v25, %v2474_v54  ;;  %v740_v21 = vmul.f32 %v2423_v25, %v2482_v59  ;;  %v741_v30 = vmul.f32 %v2423_v25, %v2498_v22  ;;  %v2861_v33 = vld [vmem:[%s2382_s30 + $0x88] sm:$0xff] }
  0x6f   : > { %v721_v35 = vsel %vm297_vm5, %v678_v2, %v720_v47  ;;  %v742_v40 = vmul.f32 %v2423_v25, %v2502_v28  ;;  %v743_v49 = vmul.f32 %v2423_v25, %v2511_v39  ;;  %v744_v57 = vmul.f32 %v2423_v25, %v2524_v50  ;;  %v2837_v39 = vld [vmem:[%s3933_s1 + $0x8] sm:$0xff] }
  0x70   : > { %v745_v54 = vmul.f32 %v2423_v25, %v2530_v56  ;;  %v746_v59 = vmul.f32 %v2423_v25, %v2538_v62  ;;  %v764_v58 = vrot.slane %v732_v46, 7  ;;  %v765_v43 = vrot.slane %v733_v20, 6  ;;  %v2868_v12 = vld [vmem:[%s2382_s30 + $0xa8] sm:$0xff] }
  0x71   : > { %v767_v22 = vrot.slane %v734_v53, 5  ;;  %v769_v60 = vrot.slane %v735_v41, 4  ;;  %v771_v48 = vrot.slane %v736_v15, 3  ;;  %v773_v28 = vrot.slane %v737_v14, 2  ;;  %v2871_v46 = vld [vmem:[%s2382_s30 + $0xc8] sm:$0xff] }
  0x72   : > { %v766_v50 = vsel %vm282_vm0, %v765_v43, %v764_v58  ;;  %v775_v51 = vrot.slane %v738_v16, 1  ;;  %v778_v56 = vrot.slane %v740_v21, 7  ;;  %v779_v1 = vrot.slane %v741_v30, 6  ;;  %v2874_v20 = vld [vmem:[%s2382_s30 + $0xe8] sm:$0xff] }
  0x73   : > { %v768_v62 = vsel %vm285_vm1, %v767_v22, %v766_v50  ;;  %v781_v24 = vrot.slane %v742_v40, 5  ;;  %v783_v10 = vrot.slane %v743_v49, 4  ;;  %v785_v17 = vrot.slane %v744_v57, 3  ;;  %v2887_v53 = vld [vmem:[%s2382_s30 + $0x148] sm:$0xff] }
  0x74   : > { %v723_v42 = vsel %vm300_vm6, %v722_v37, %v721_v35  ;;  %v770_v52 = vsel %vm288_vm2, %v769_v60, %v768_v62  ;;  %v780_v18 = vsel %vm282_vm0, %v779_v1, %v778_v56  ;;  %v787_v61 = vrot.slane %v745_v54, 2  ;;  %v2890_v41 = vld [vmem:[%s2382_s30 + $0x168] sm:$0xff] }
  0x75   : > { %v772_v36 = vsel %vm291_vm3, %v771_v48, %v770_v52  ;;  %v782_v13 = vsel %vm285_vm1, %v781_v24, %v780_v18  ;;  %v789_v2 = vrot.slane %v746_v59, 1  ;;  %v799_v29 = vrot.slane %v2837_v39, %v2363_v3  ;;  %v2903_v16 = vld [vmem:[%s2382_s30 + $0x108] sm:$0xff] }
  0x76   : > { %v726_v63 = vadd.f32 %v709_v44, %v658_v55  ;;  %v747_v45 = vmul.f32 %v2423_v25, %v2551_v31  ;;  %v774_v37 = vsel %vm294_vm4, %v773_v28, %v772_v36  ;;  %v784_v27 = vsel %vm288_vm2, %v783_v10, %v782_v13  ;;  %v2884_v31 = vld [vmem:[%s2382_s30 + $0x128] sm:$0xff] }
  0x77   : > { %v727_v34 = vadd.f32 %v723_v42, %v2786_v26  ;;  %v776_v55 = vsel %vm297_vm5, %v775_v51, %v774_v37  ;;  %v786_v38 = vsel %vm291_vm3, %v785_v17, %v784_v27  ;;  %v2881_v25 = vrot.slane %v2837_v39, %v2365_v4  ;;  %v2906_v44 = vld [vmem:[%s2382_s30 + $0x188] sm:$0xff] }
  0x78   : > { %v788_v47 = vsel %vm294_vm4, %v787_v61, %v786_v38  ;;  %v800_v26 = vmul.f32 %v799_v29, %v2845_v0  ;;  %v2896_v15 = vrot.slane %v2837_v39, %v2367_v5  ;;  %v2900_v14 = vrot.slane %v2837_v39, %v2369_v6  ;;  %v2909_v21 = vld [vmem:[%s2382_s30 + $0x1a8] sm:$0xff] }
  0x79   : > { %v790_v30 = vsel %vm297_vm5, %v789_v2, %v788_v47  ;;  %v801_v35 = vmul.f32 %v799_v29, %v2848_v23  ;;  %v802_v40 = vmul.f32 %v799_v29, %v2855_v19  ;;  %v803_v49 = vmul.f32 %v799_v29, %v2858_v32  ;;  %v2916_v57 = vld [vmem:[%s2382_s30 + $0x1c8] sm:$0xff] }
  0x7a   : > { %v777_v54 = vsel %vm300_vm6, %v2817_v11, %v776_v55  ;;  %v791_v59 = vsel %vm300_vm6, %v747_v45, %v790_v30  ;;  %v804_v58 = vmul.f32 %v799_v29, %v2861_v33  ;;  %v805_v43 = vmul.f32 %v799_v29, %v2868_v12  ;;  %v2924_v22 = vld [vmem:[%s2382_s30 + $0x1e8] sm:$0xff] }
  0x7b   : > { %v806_v60 = vmul.f32 %v799_v29, %v2871_v46  ;;  %v809_v48 = vmul.f32 %v799_v29, %v2884_v31  ;;  %v810_v28 = vmul.f32 %v799_v29, %v2887_v53  ;;  %v811_v50 = vmul.f32 %v799_v29, %v2890_v41 }
  0x7c   : > { %v807_v51 = vmul.f32 %v799_v29, %v2874_v20  ;;  %v808_v11 = vmul.f32 %v799_v29, %v2903_v16  ;;  %v812_v56 = vmul.f32 %v799_v29, %v2906_v44  ;;  %v813_v1 = vmul.f32 %v799_v29, %v2909_v21 }
  0x7d   : > { %v814_v62 = vmul.f32 %v799_v29, %v2916_v57  ;;  %v832_v24 = vrot.slane %v801_v35, 7  ;;  %v834_v10 = vrot.slane %v802_v40, 6  ;;  %v836_v17 = vrot.slane %v803_v49, 5 }
  0x7e   : > { %v815_v42 = vmul.f32 %v799_v29, %v2924_v22  ;;  %v838_v52 = vrot.slane %v804_v58, 4  ;;  %v840_v18 = vrot.slane %v805_v43, 3  ;;  %v846_v61 = vrot.slane %v809_v48, 7 }
  0x7f   : > { %v833_v36 = vsel %vm282_vm0, %v832_v24, %v800_v26  ;;  %v848_v13 = vrot.slane %v810_v28, 6  ;;  %v850_v2 = vrot.slane %v811_v50, 5  ;;  %v852_v45 = vrot.slane %v812_v56, 4 }
  0x80   : > { %v835_v37 = vsel %vm285_vm1, %v834_v10, %v833_v36  ;;  %v842_v27 = vrot.slane %v806_v60, 2  ;;  %v847_v55 = vsel %vm282_vm0, %v846_v61, %v808_v11  ;;  %v854_v38 = vrot.slane %v813_v1, 3 }
  0x81   : > { %v794_v47 = vadd.f32 %v777_v54, %v726_v63  ;;  %v837_v30 = vsel %vm288_vm2, %v836_v17, %v835_v37  ;;  %v849_v35 = vsel %vm285_vm1, %v848_v13, %v847_v55  ;;  %v856_v29 = vrot.slane %v814_v62, 2 }
  0x82   : > { %v795_v40 = vadd.f32 %v791_v59, %v727_v34  ;;  %v839_v49 = vsel %vm291_vm3, %v838_v52, %v837_v30  ;;  %v844_v58 = vrot.slane %v807_v51, 1  ;;  %v851_v26 = vsel %vm288_vm2, %v850_v2, %v849_v35 }
  0x83   : > { %v841_v43 = vsel %vm294_vm4, %v840_v18, %v839_v49  ;;  %v853_v48 = vsel %vm291_vm3, %v852_v45, %v851_v26  ;;  %v858_v60 = vrot.slane %v815_v42, 1  ;;  %v868_v28 = vmul.f32 %v2881_v25, %v2845_v0 }
  0x84   : > { %v843_v63 = vsel %vm297_vm5, %v842_v27, %v841_v43  ;;  %v855_v54 = vsel %vm294_vm4, %v854_v38, %v853_v48  ;;  %v869_v34 = vmul.f32 %v2881_v25, %v2848_v23  ;;  %v870_v59 = vmul.f32 %v2881_v25, %v2855_v19 }
  0x85   : > { %v857_v50 = vsel %vm297_vm5, %v856_v29, %v855_v54  ;;  %v871_v51 = vmul.f32 %v2881_v25, %v2858_v32  ;;  %v872_v11 = vmul.f32 %v2881_v25, %v2861_v33  ;;  %v873_v56 = vmul.f32 %v2881_v25, %v2868_v12 }
  0x86   : > { %v845_v1 = vsel %vm300_vm6, %v844_v58, %v843_v63  ;;  %v874_v62 = vmul.f32 %v2881_v25, %v2871_v46  ;;  %v876_v24 = vmul.f32 %v2881_v25, %v2903_v16  ;;  %v878_v10 = vmul.f32 %v2881_v25, %v2887_v53 }
  0x87   : > { %v859_v17 = vsel %vm300_vm6, %v858_v60, %v857_v50  ;;  %v875_v42 = vmul.f32 %v2881_v25, %v2874_v20  ;;  %v879_v52 = vmul.f32 %v2881_v25, %v2890_v41  ;;  %v880_v18 = vmul.f32 %v2881_v25, %v2906_v44 }
  0x88   : > { %v877_v61 = vmul.f32 %v2881_v25, %v2884_v31  ;;  %v881_v36 = vmul.f32 %v2881_v25, %v2909_v21  ;;  %v900_v13 = vrot.slane %v868_v28, 1  ;;  %v902_v2 = vrot.slane %v870_v59, 7 }
  0x89   : > { %v882_v45 = vmul.f32 %v2881_v25, %v2916_v57  ;;  %v883_v37 = vmul.f32 %v2881_v25, %v2924_v22  ;;  %v904_v27 = vrot.slane %v871_v51, 6  ;;  %v906_v55 = vrot.slane %v872_v11, 5 }
  0x8a   : > { %v901_v38 = vsel %vm282_vm0, %v869_v34, %v900_v13  ;;  %v908_v30 = vrot.slane %v873_v56, 4  ;;  %v914_v35 = vrot.slane %v876_v24, 1  ;;  %v916_v29 = vrot.slane %v878_v10, 7 }
  0x8b   : > { %v903_v49 = vsel %vm285_vm1, %v902_v2, %v901_v38  ;;  %v910_v58 = vrot.slane %v874_v62, 3  ;;  %v918_v26 = vrot.slane %v879_v52, 6  ;;  %v920_v43 = vrot.slane %v880_v18, 5 }
  0x8c   : > { %v905_v48 = vsel %vm288_vm2, %v904_v27, %v903_v49  ;;  %v912_v60 = vrot.slane %v875_v42, 2  ;;  %v915_v28 = vsel %vm282_vm0, %v877_v61, %v914_v35  ;;  %v922_v63 = vrot.slane %v881_v36, 4 }
  0x8d   : > { %v862_v54 = vadd.f32 %v845_v1, %v794_v47  ;;  %v907_v25 = vsel %vm291_vm3, %v906_v55, %v905_v48  ;;  %v917_v59 = vsel %vm285_vm1, %v916_v29, %v915_v28  ;;  %v924_v34 = vrot.slane %v882_v45, 3 }
  0x8e   : > { %v863_v50 = vadd.f32 %v859_v17, %v795_v40  ;;  %v909_v51 = vsel %vm294_vm4, %v908_v30, %v907_v25  ;;  %v919_v11 = vsel %vm288_vm2, %v918_v26, %v917_v59  ;;  %v926_v56 = vrot.slane %v883_v37, 2 }
  0x8f   : > { %v911_v62 = vsel %vm297_vm5, %v910_v58, %v909_v51  ;;  %v921_v24 = vsel %vm291_vm3, %v920_v43, %v919_v11  ;;  %v936_v10 = vmul.f32 %v2896_v15, %v2845_v0  ;;  %v937_v47 = vmul.f32 %v2896_v15, %v2848_v23 }
  0x90   : > { %v913_v1 = vsel %vm300_vm6, %v912_v60, %v911_v62  ;;  %v923_v42 = vsel %vm294_vm4, %v922_v63, %v921_v24  ;;  %v938_v40 = vmul.f32 %v2896_v15, %v2855_v19  ;;  %v939_v17 = vmul.f32 %v2896_v15, %v2858_v32 }
  0x91   : > { %v925_v52 = vsel %vm297_vm5, %v924_v34, %v923_v42  ;;  %v940_v18 = vmul.f32 %v2896_v15, %v2861_v33  ;;  %v941_v61 = vmul.f32 %v2896_v15, %v2868_v12  ;;  %v944_v36 = vmul.f32 %v2896_v15, %v2903_v16 }
  0x92   : > { %v942_v13 = vmul.f32 %v2896_v15, %v2871_v46  ;;  %v943_v2 = vmul.f32 %v2896_v15, %v2874_v20  ;;  %v945_v45 = vmul.f32 %v2896_v15, %v2884_v31  ;;  %v947_v37 = vmul.f32 %v2896_v15, %v2890_v41 }
  0x93   : > { %v927_v27 = vsel %vm300_vm6, %v926_v56, %v925_v52  ;;  %v3018_v55 = vadd.f32 %v913_v1, %v862_v54  ;;  %v946_v38 = vmul.f32 %v2896_v15, %v2887_v53  ;;  %v948_v30 = vmul.f32 %v2896_v15, %v2906_v44 }
  0x94   : > { %v949_v35 = vmul.f32 %v2896_v15, %v2909_v21  ;;  %v968_v29 = vrot.slane %v936_v10, 2  ;;  %v969_v49 = vrot.slane %v937_v47, 1  ;;  %v972_v58 = vrot.slane %v939_v17, 7 }
  0x95   : > { %v950_v26 = vmul.f32 %v2896_v15, %v2916_v57  ;;  %v951_v43 = vmul.f32 %v2896_v15, %v2924_v22  ;;  %v974_v48 = vrot.slane %v940_v18, 6  ;;  %v982_v60 = vrot.slane %v944_v36, 2 }
  0x96   : > { %v970_v28 = vsel %vm282_vm0, %v969_v49, %v968_v29  ;;  %v976_v63 = vrot.slane %v941_v61, 5  ;;  %v983_v54 = vrot.slane %v945_v45, 1  ;;  %v986_v25 = vrot.slane %v947_v37, 7 }
  0x97   : > { %v931_v59 = vadd.f32 %v927_v27, %v863_v50  ;;  %v971_v34 = vsel %vm285_vm1, %v938_v40, %v970_v28  ;;  %v978_v51 = vrot.slane %v942_v13, 4  ;;  %v988_v11 = vrot.slane %v948_v30, 6 }
  0x98   : > { %v973_v56 = vsel %vm288_vm2, %v972_v58, %v971_v34  ;;  %v980_v62 = vrot.slane %v943_v2, 3  ;;  %v984_v24 = vsel %vm282_vm0, %v983_v54, %v982_v60  ;;  %v990_v10 = vrot.slane %v949_v35, 5 }
  0x99   : > { %v975_v15 = vsel %vm291_vm3, %v974_v48, %v973_v56  ;;  %v985_v47 = vsel %vm285_vm1, %v946_v38, %v984_v24  ;;  %v992_v1 = vrot.slane %v950_v26, 4  ;;  %v994_v42 = vrot.slane %v951_v43, 3 }
  0x9a   : > { %v977_v17 = vsel %vm294_vm4, %v976_v63, %v975_v15  ;;  %v987_v50 = vsel %vm288_vm2, %v986_v25, %v985_v47  ;;  %v1004_v40 = vmul.f32 %v2900_v14, %v2845_v0  ;;  %v1005_v52 = vmul.f32 %v2900_v14, %v2848_v23 }
  0x9b   : > { %v979_v18 = vsel %vm297_vm5, %v978_v51, %v977_v17  ;;  %v989_v61 = vsel %vm291_vm3, %v988_v11, %v987_v50  ;;  %v1006_v36 = vmul.f32 %v2900_v14, %v2855_v19  ;;  %v1007_v13 = vmul.f32 %v2900_v14, %v2858_v32 }
  0x9c   : > { %v991_v2 = vsel %vm294_vm4, %v990_v10, %v989_v61  ;;  %v1008_v45 = vmul.f32 %v2900_v14, %v2861_v33  ;;  %v1009_v37 = vmul.f32 %v2900_v14, %v2868_v12  ;;  %v1010_v27 = vmul.f32 %v2900_v14, %v2871_v46 }
  0x9d   : > { %v993_v38 = vsel %vm297_vm5, %v992_v1, %v991_v2  ;;  %v1011_v30 = vmul.f32 %v2900_v14, %v2874_v20  ;;  %v1012_v35 = vmul.f32 %v2900_v14, %v2903_v16  ;;  %v1013_v29 = vmul.f32 %v2900_v14, %v2884_v31 }
  0x9e   : > { %v981_v49 = vsel %vm300_vm6, %v980_v62, %v979_v18  ;;  %v1014_v58 = vmul.f32 %v2900_v14, %v2887_v53  ;;  %v1015_v26 = vmul.f32 %v2900_v14, %v2890_v41  ;;  %v1016_v43 = vmul.f32 %v2900_v14, %v2906_v44 }
  0x9f   : > { %v995_v48 = vsel %vm300_vm6, %v994_v42, %v993_v38  ;;  %v1017_v60 = vmul.f32 %v2900_v14, %v2909_v21  ;;  %v1036_v28 = vrot.slane %v1004_v40, 3  ;;  %v1037_v63 = vrot.slane %v1005_v52, 2 }
  0xa0   : > { %v1018_v54 = vmul.f32 %v2900_v14, %v2916_v57  ;;  %v1019_v25 = vmul.f32 %v2900_v14, %v2924_v22  ;;  %v1039_v34 = vrot.slane %v1006_v36, 1  ;;  %v1042_v51 = vrot.slane %v1008_v45, 7 }
  0xa1   : > { %v1038_v11 = vsel %vm282_vm0, %v1037_v63, %v1036_v28  ;;  %v1044_v56 = vrot.slane %v1009_v37, 6  ;;  %v1050_v62 = vrot.slane %v1012_v35, 3  ;;  %v1051_v24 = vrot.slane %v1013_v29, 2  ;;  %v3941_v63 = vld [vmem:[#allocation5_spill] sm:$0xff] }
  0xa2   : > { %v1040_v10 = vsel %vm285_vm1, %v1039_v34, %v1038_v11  ;;  %v1046_v15 = vrot.slane %v1010_v27, 5  ;;  %v1053_v47 = vrot.slane %v1014_v58, 1  ;;  %v1056_v1 = vrot.slane %v1016_v43, 7 }
  0xa3   : > { %v1041_v42 = vsel %vm288_vm2, %v1007_v13, %v1040_v10  ;;  %v1048_v17 = vrot.slane %v1011_v30, 4  ;;  %v1052_v50 = vsel %vm282_vm0, %v1051_v24, %v1050_v62  ;;  %v1058_v40 = vrot.slane %v1017_v60, 6 }
  0xa4   : > { %v1043_v14 = vsel %vm291_vm3, %v1042_v51, %v1041_v42  ;;  %v1054_v52 = vsel %vm285_vm1, %v1053_v47, %v1052_v50  ;;  %v1060_v18 = vrot.slane %v1018_v54, 5  ;;  %v1071_v61 = vrot.slane %v2837_v39, %v2371_v7 }
  0xa5   : > { %v998_v36 = vadd.f32 %v981_v49, %v3018_v55  ;;  %v999_v2 = vadd.f32 %v995_v48, %v931_v59  ;;  %v1045_v45 = vsel %vm294_vm4, %v1044_v56, %v1043_v14  ;;  %v1055_v37 = vsel %vm288_vm2, %v1015_v26, %v1054_v52 }
  0xa6   : > { %v1047_v13 = vsel %vm297_vm5, %v1046_v15, %v1045_v45  ;;  %v1057_v27 = vsel %vm291_vm3, %v1056_v1, %v1055_v37  ;;  %v1062_v38 = vrot.slane %v1019_v25, 4  ;;  %v3091_v30 = vrot.slane %v2837_v39, %v2373_v8 }
  0xa7   : > { %v1049_v35 = vsel %vm300_vm6, %v1048_v17, %v1047_v13  ;;  %v1059_v29 = vsel %vm294_vm4, %v1058_v40, %v1057_v27  ;;  %v1072_v55 = vmul.f32 %v1071_v61, %v2845_v0  ;;  %v3098_v59 = vrot.slane %v2837_v39, %v2375_v9 }
  0xa8   : > { %v1061_v49 = vsel %vm297_vm5, %v1060_v18, %v1059_v29  ;;  %v1073_v58 = vmul.f32 %v1071_v61, %v2848_v23  ;;  %v1074_v26 = vmul.f32 %v1071_v61, %v2855_v19  ;;  %v1075_v43 = vmul.f32 %v1071_v61, %v2858_v32 }
  0xa9   : > { %v3104_v48 = vadd.f32 %v1049_v35, %v998_v36  ;;  %v1077_v60 = vmul.f32 %v1071_v61, %v2868_v12  ;;  %v1080_v28 = vmul.f32 %v1071_v61, %v2903_v16  ;;  %v3110_v54 = vrot.slane %v2837_v39, %v3941_v63 }
  0xaa   : > { %v1076_v25 = vmul.f32 %v1071_v61, %v2861_v33  ;;  %v1081_v34 = vmul.f32 %v1071_v61, %v2884_v31  ;;  %v1082_v51 = vmul.f32 %v1071_v61, %v2887_v53  ;;  %v1083_v11 = vmul.f32 %v1071_v61, %v2890_v41 }
  0xab   : > { %v1063_v56 = vsel %vm300_vm6, %v1062_v38, %v1061_v49  ;;  %v1078_v62 = vmul.f32 %v1071_v61, %v2871_v46  ;;  %v1079_v24 = vmul.f32 %v1071_v61, %v2874_v20  ;;  %v1085_v10 = vmul.f32 %v1071_v61, %v2909_v21 }
  0xac   : > { %v1104_v15 = vrot.slane %v1072_v55, 4  ;;  %v1105_v47 = vrot.slane %v1073_v58, 3  ;;  %v1107_v39 = vrot.slane %v1074_v26, 2  ;;  %v1109_v1 = vrot.slane %v1075_v43, 1 }
  0xad   : > { %v1086_v42 = vmul.f32 %v1071_v61, %v2916_v57  ;;  %v1087_v17 = vmul.f32 %v1071_v61, %v2924_v22  ;;  %v1112_v50 = vrot.slane %v1077_v60, 7  ;;  %v1118_v40 = vrot.slane %v1080_v28, 4 }
  0xae   : > { %v1106_v14 = vsel %vm282_vm0, %v1105_v47, %v1104_v15  ;;  %v1119_v52 = vrot.slane %v1081_v34, 3  ;;  %v1121_v18 = vrot.slane %v1082_v51, 2  ;;  %v1123_v36 = vrot.slane %v1083_v11, 1 }
  0xaf   : > { %v1067_v45 = vadd.f32 %v1063_v56, %v999_v2  ;;  %v1084_v37 = vmul.f32 %v1071_v61, %v2906_v44  ;;  %v1108_v13 = vsel %vm285_vm1, %v1107_v39, %v1106_v14  ;;  %v1114_v27 = vrot.slane %v1078_v62, 6 }
  0xb0   : > { %v1110_v38 = vsel %vm288_vm2, %v1109_v1, %v1108_v13  ;;  %v1116_v35 = vrot.slane %v1079_v24, 5  ;;  %v1120_v29 = vsel %vm282_vm0, %v1119_v52, %v1118_v40  ;;  %v1126_v55 = vrot.slane %v1085_v10, 7 }
  0xb1   : > { %v1111_v49 = vsel %vm291_vm3, %v1076_v25, %v1110_v38  ;;  %v1122_v58 = vsel %vm285_vm1, %v1121_v18, %v1120_v29  ;;  %v1128_v26 = vrot.slane %v1086_v42, 6  ;;  %v1130_v43 = vrot.slane %v1087_v17, 5 }
  0xb2   : > { %v1113_v60 = vsel %vm294_vm4, %v1112_v50, %v1111_v49  ;;  %v1124_v2 = vsel %vm288_vm2, %v1123_v36, %v1122_v58  ;;  %v1140_v61 = vmul.f32 %v3091_v30, %v2845_v0  ;;  %v1141_v28 = vmul.f32 %v3091_v30, %v2848_v23 }
  0xb3   : > { %v1115_v34 = vsel %vm297_vm5, %v1114_v27, %v1113_v60  ;;  %v1125_v51 = vsel %vm291_vm3, %v1084_v37, %v1124_v2  ;;  %v1142_v25 = vmul.f32 %v3091_v30, %v2855_v19  ;;  %v1143_v11 = vmul.f32 %v3091_v30, %v2858_v32 }
  0xb4   : > { %v1127_v56 = vsel %vm294_vm4, %v1126_v55, %v1125_v51  ;;  %v1144_v62 = vmul.f32 %v3091_v30, %v2861_v33  ;;  %v1145_v24 = vmul.f32 %v3091_v30, %v2868_v12  ;;  %v1146_v10 = vmul.f32 %v3091_v30, %v2871_v46 }
  0xb5   : > { %v1129_v15 = vsel %vm297_vm5, %v1128_v26, %v1127_v56  ;;  %v1147_v47 = vmul.f32 %v3091_v30, %v2874_v20  ;;  %v1148_v39 = vmul.f32 %v3091_v30, %v2903_v16  ;;  %v1149_v1 = vmul.f32 %v3091_v30, %v2884_v31 }
  0xb6   : > { %v1117_v42 = vsel %vm300_vm6, %v1116_v35, %v1115_v34  ;;  %v1150_v17 = vmul.f32 %v3091_v30, %v2887_v53  ;;  %v1151_v50 = vmul.f32 %v3091_v30, %v2890_v41  ;;  %v1152_v40 = vmul.f32 %v3091_v30, %v2906_v44 }
  0xb7   : > { %v1131_v14 = vsel %vm300_vm6, %v1130_v43, %v1129_v15  ;;  %v1154_v52 = vmul.f32 %v3091_v30, %v2916_v57  ;;  %v1172_v18 = vrot.slane %v1140_v61, 5  ;;  %v1173_v36 = vrot.slane %v1141_v28, 4 }
  0xb8   : > { %v1155_v37 = vmul.f32 %v3091_v30, %v2924_v22  ;;  %v1175_v13 = vrot.slane %v1142_v25, 3  ;;  %v1177_v27 = vrot.slane %v1143_v11, 2  ;;  %v1179_v38 = vrot.slane %v1144_v62, 1 }
  0xb9   : > { %v1174_v35 = vsel %vm282_vm0, %v1173_v36, %v1172_v18  ;;  %v1182_v29 = vrot.slane %v1146_v10, 7  ;;  %v1186_v55 = vrot.slane %v1148_v39, 5  ;;  %v1187_v49 = vrot.slane %v1149_v1, 4 }
  0xba   : > { %v1176_v58 = vsel %vm285_vm1, %v1175_v13, %v1174_v35  ;;  %v1189_v26 = vrot.slane %v1150_v17, 3  ;;  %v1191_v43 = vrot.slane %v1151_v50, 2  ;;  %v1193_v60 = vrot.slane %v1152_v40, 1 }
  0xbb   : > { %v1134_v2 = vadd.f32 %v1117_v42, %v3104_v48  ;;  %v1153_v61 = vmul.f32 %v3091_v30, %v2909_v21  ;;  %v1178_v28 = vsel %vm288_vm2, %v1177_v27, %v1176_v58  ;;  %v1188_v34 = vsel %vm282_vm0, %v1187_v49, %v1186_v55 }
  0xbc   : > { %v1180_v51 = vsel %vm291_vm3, %v1179_v38, %v1178_v28  ;;  %v1184_v25 = vrot.slane %v1147_v47, 6  ;;  %v1190_v11 = vsel %vm285_vm1, %v1189_v26, %v1188_v34  ;;  %v1196_v56 = vrot.slane %v1154_v52, 7 }
  0xbd   : > { %v1135_v62 = vadd.f32 %v1131_v14, %v1067_v45  ;;  %v1181_v10 = vsel %vm294_vm4, %v1145_v24, %v1180_v51  ;;  %v1192_v15 = vsel %vm288_vm2, %v1191_v43, %v1190_v11  ;;  %v1198_v39 = vrot.slane %v1155_v37, 6 }
  0xbe   : > { %v1183_v48 = vsel %vm297_vm5, %v1182_v29, %v1181_v10  ;;  %v1194_v30 = vsel %vm291_vm3, %v1193_v60, %v1192_v15  ;;  %v1208_v1 = vmul.f32 %v3098_v59, %v2845_v0  ;;  %v1209_v42 = vmul.f32 %v3098_v59, %v2848_v23 }
  0xbf   : > { %v1195_v47 = vsel %vm294_vm4, %v1153_v61, %v1194_v30  ;;  %v1210_v45 = vmul.f32 %v3098_v59, %v2855_v19  ;;  %v1211_v24 = vmul.f32 %v3098_v59, %v2858_v32  ;;  %v1212_v17 = vmul.f32 %v3098_v59, %v2861_v33 }
  0xc0   : > { %v1185_v50 = vsel %vm300_vm6, %v1184_v25, %v1183_v48  ;;  %v1197_v40 = vsel %vm297_vm5, %v1196_v56, %v1195_v47  ;;  %v1213_v14 = vmul.f32 %v3098_v59, %v2868_v12  ;;  %v1216_v52 = vmul.f32 %v3098_v59, %v2903_v16 }
  0xc1   : > { %v1214_v18 = vmul.f32 %v3098_v59, %v2871_v46  ;;  %v1217_v36 = vmul.f32 %v3098_v59, %v2884_v31  ;;  %v1218_v37 = vmul.f32 %v3098_v59, %v2887_v53  ;;  %v1219_v13 = vmul.f32 %v3098_v59, %v2890_v41 }
  0xc2   : > { %v1199_v27 = vsel %vm300_vm6, %v1198_v39, %v1197_v40  ;;  %v1215_v38 = vmul.f32 %v3098_v59, %v2874_v20  ;;  %v1220_v35 = vmul.f32 %v3098_v59, %v2906_v44  ;;  %v1221_v29 = vmul.f32 %v3098_v59, %v2909_v21 }
  0xc3   : > { %v1240_v55 = vrot.slane %v1208_v1, 6  ;;  %v1241_v49 = vrot.slane %v1209_v42, 5  ;;  %v1243_v58 = vrot.slane %v1210_v45, 4  ;;  %v1245_v26 = vrot.slane %v1211_v24, 3 }
  0xc4   : > { %v1223_v43 = vmul.f32 %v3098_v59, %v2924_v22  ;;  %v1247_v60 = vrot.slane %v1212_v17, 2  ;;  %v1249_v61 = vrot.slane %v1213_v14, 1  ;;  %v1254_v28 = vrot.slane %v1216_v52, 6 }
  0xc5   : > { %v1242_v34 = vsel %vm282_vm0, %v1241_v49, %v1240_v55  ;;  %v1255_v51 = vrot.slane %v1217_v36, 5  ;;  %v1257_v25 = vrot.slane %v1218_v37, 4  ;;  %v1259_v11 = vrot.slane %v1219_v13, 3 }
  0xc6   : > { %v1202_v56 = vadd.f32 %v1185_v50, %v1134_v2  ;;  %v3215_v10 = vadd.f32 %v1199_v27, %v1135_v62  ;;  %v1244_v15 = vsel %vm285_vm1, %v1243_v58, %v1242_v34  ;;  %v1261_v39 = vrot.slane %v1220_v35, 2 }
  0xc7   : > { %v1222_v48 = vmul.f32 %v3098_v59, %v2916_v57  ;;  %v1246_v30 = vsel %vm288_vm2, %v1245_v26, %v1244_v15  ;;  %v1256_v1 = vsel %vm282_vm0, %v1255_v51, %v1254_v28  ;;  %v1263_v42 = vrot.slane %v1221_v29, 1  ;;  %v3277_v15 = vld [vmem:[%s2382_s30 + $0x30] sm:$0xff] }
  0xc8   : > { %v1248_v47 = vsel %vm291_vm3, %v1247_v60, %v1246_v30  ;;  %v1252_v45 = vrot.slane %v1215_v38, 7  ;;  %v1258_v24 = vsel %vm285_vm1, %v1257_v25, %v1256_v1  ;;  %v1266_v17 = vrot.slane %v1223_v43, 7 }
  0xc9   : > { %v1250_v2 = vsel %vm294_vm4, %v1249_v61, %v1248_v47  ;;  %v1260_v62 = vsel %vm288_vm2, %v1259_v11, %v1258_v24  ;;  %v1276_v50 = vmul.f32 %v3110_v54, %v2845_v0  ;;  %v1277_v59 = vmul.f32 %v3110_v54, %v2848_v23  ;;  %v3274_v11 = vld [vmem:[%s2382_s30 + $0x10] sm:$0xff] }
  0xca   : > { %v1251_v40 = vsel %vm297_vm5, %v1214_v18, %v1250_v2  ;;  %v1262_v14 = vsel %vm291_vm3, %v1261_v39, %v1260_v62  ;;  %v1278_v52 = vmul.f32 %v3110_v54, %v2855_v19  ;;  %v1279_v36 = vmul.f32 %v3110_v54, %v2858_v32  ;;  %v3287_v47 = vld [vmem:[%s2382_s30 + $0x70] sm:$0xff] }
  0xcb   : > { %v1264_v37 = vsel %vm294_vm4, %v1263_v42, %v1262_v14  ;;  %v1280_v13 = vmul.f32 %v3110_v54, %v2861_v33  ;;  %v1281_v0 = vmul.f32 %v3110_v54, %v2868_v12  ;;  %v1282_v23 = vmul.f32 %v3110_v54, %v2871_v46  ;;  %v3284_v42 = vld [vmem:[%s2382_s30 + $0x50] sm:$0xff] }
  0xcc   : > { %v1253_v18 = vsel %vm300_vm6, %v1252_v45, %v1251_v40  ;;  %v3246_v27 = vmul.f32 %v3110_v54, %v2874_v20  ;;  %v1284_v19 = vmul.f32 %v3110_v54, %v2903_v16  ;;  %v1285_v32 = vmul.f32 %v3110_v54, %v2884_v31  ;;  %v3290_v45 = vld [vmem:[%s2382_s30 + $0x90] sm:$0xff] }
  0xcd   : > { %v1265_v33 = vsel %vm297_vm5, %v1222_v48, %v1264_v37  ;;  %v1286_v12 = vmul.f32 %v3110_v54, %v2887_v53  ;;  %v1287_v46 = vmul.f32 %v3110_v54, %v2890_v41  ;;  %v1288_v38 = vmul.f32 %v3110_v54, %v2906_v44  ;;  %v3266_v41 = vld [vmem:[%s3933_s1 + $0x10] sm:$0xff] }
  0xce   : > { %v1289_v20 = vmul.f32 %v3110_v54, %v2909_v21  ;;  %v1290_v16 = vmul.f32 %v3110_v54, %v2916_v57  ;;  %v1308_v35 = vrot.slane %v1276_v50, 7  ;;  %v1309_v29 = vrot.slane %v1277_v59, 6  ;;  %v3297_v50 = vld [vmem:[%s2382_s30 + $0xb0] sm:$0xff] }
  0xcf   : > { %v1311_v31 = vrot.slane %v1278_v52, 5  ;;  %v1313_v55 = vrot.slane %v1279_v36, 4  ;;  %v1315_v49 = vrot.slane %v1280_v13, 3  ;;  %v1317_v53 = vrot.slane %v1281_v0, 2  ;;  %v3300_v59 = vld [vmem:[%s2382_s30 + $0xd0] sm:$0xff] }
  0xd0   : > { %v1310_v44 = vsel %vm282_vm0, %v1309_v29, %v1308_v35  ;;  %v1319_v58 = vrot.slane %v1282_v23, 1  ;;  %v1322_v21 = vrot.slane %v1284_v19, 7  ;;  %v1323_v26 = vrot.slane %v1285_v32, 6  ;;  %v3303_v40 = vld [vmem:[%s2382_s30 + $0xf0] sm:$0xff] }
  0xd1   : > { %v1312_v57 = vsel %vm285_vm1, %v1311_v31, %v1310_v44  ;;  %v1325_v43 = vrot.slane %v1286_v12, 5  ;;  %v1327_v60 = vrot.slane %v1287_v46, 4  ;;  %v1329_v61 = vrot.slane %v1288_v38, 3  ;;  %v3316_v36 = vld [vmem:[%s2382_s30 + $0x150] sm:$0xff] }
  0xd2   : > { %v1267_v28 = vsel %vm300_vm6, %v1266_v17, %v1265_v33  ;;  %v1314_v34 = vsel %vm288_vm2, %v1313_v55, %v1312_v57  ;;  %v1324_v51 = vsel %vm282_vm0, %v1323_v26, %v1322_v21  ;;  %v1331_v25 = vrot.slane %v1289_v20, 2  ;;  %v3319_v37 = vld [vmem:[%s2382_s30 + $0x170] sm:$0xff] }
  0xd3   : > { %v1316_v39 = vsel %vm291_vm3, %v1315_v49, %v1314_v34  ;;  %v1326_v48 = vsel %vm285_vm1, %v1325_v43, %v1324_v51  ;;  %v1333_v30 = vrot.slane %v1290_v16, 1  ;;  %v1343_v1 = vrot.slane %v3266_v41, %v2363_v3  ;;  %v3335_v19 = vld [vmem:[%s2382_s30 + $0x190] sm:$0xff] }
  0xd4   : > { %v1270_v24 = vadd.f32 %v1253_v18, %v1202_v56  ;;  %v1291_v17 = vmul.f32 %v3110_v54, %v2924_v22  ;;  %v1318_v2 = vsel %vm294_vm4, %v1317_v53, %v1316_v39  ;;  %v1328_v62 = vsel %vm288_vm2, %v1327_v60, %v1326_v48  ;;  %v3313_v54 = vld [vmem:[%s2382_s30 + $0x130] sm:$0xff] }
  0xd5   : > { %v1271_v14 = vadd.f32 %v1267_v28, %v3215_v10  ;;  %v1320_v56 = vsel %vm297_vm5, %v1319_v58, %v1318_v2  ;;  %v1330_v52 = vsel %vm291_vm3, %v1329_v61, %v1328_v62  ;;  %v3310_v22 = vrot.slane %v3266_v41, %v2365_v4  ;;  %v3332_v18 = vld [vmem:[%s2382_s30 + $0x110] sm:$0xff] }
  0xd6   : > { %v1332_v13 = vsel %vm294_vm4, %v1331_v25, %v1330_v52  ;;  %v1344_v10 = vmul.f32 %v1343_v1, %v3274_v11  ;;  %v3325_v0 = vrot.slane %v3266_v41, %v2367_v5  ;;  %v3329_v23 = vrot.slane %v3266_v41, %v2369_v6  ;;  %v3338_v32 = vld [vmem:[%s2382_s30 + $0x1b0] sm:$0xff] }
  0xd7   : > { %v1334_v33 = vsel %vm297_vm5, %v1333_v30, %v1332_v13  ;;  %v1345_v12 = vmul.f32 %v1343_v1, %v3277_v15  ;;  %v1346_v46 = vmul.f32 %v1343_v1, %v3284_v42  ;;  %v1347_v38 = vmul.f32 %v1343_v1, %v3287_v47  ;;  %v3345_v20 = vld [vmem:[%s2382_s30 + $0x1d0] sm:$0xff] }
  0xd8   : > { %v1321_v6 = vsel %vm300_vm6, %v3246_v27, %v1320_v56  ;;  %v1335_v16 = vsel %vm300_vm6, %v1291_v17, %v1334_v33  ;;  %v1348_v35 = vmul.f32 %v1343_v1, %v3290_v45  ;;  %v1349_v29 = vmul.f32 %v1343_v1, %v3297_v50  ;;  %v3353_v31 = vld [vmem:[%s2382_s30 + $0x1f0] sm:$0xff] }
  0xd9   : > { %v1350_v55 = vmul.f32 %v1343_v1, %v3300_v59  ;;  %v1353_v49 = vmul.f32 %v1343_v1, %v3313_v54  ;;  %v1354_v53 = vmul.f32 %v1343_v1, %v3316_v36  ;;  %v1355_v44 = vmul.f32 %v1343_v1, %v3319_v37 }
  0xda   : > { %v1351_v58 = vmul.f32 %v1343_v1, %v3303_v40  ;;  %v1352_v27 = vmul.f32 %v1343_v1, %v3332_v18  ;;  %v1356_v21 = vmul.f32 %v1343_v1, %v3335_v19  ;;  %v1357_v26 = vmul.f32 %v1343_v1, %v3338_v32 }
  0xdb   : > { %v1358_v57 = vmul.f32 %v1343_v1, %v3345_v20  ;;  %v1376_v43 = vrot.slane %v1345_v12, 7  ;;  %v1378_v60 = vrot.slane %v1346_v46, 6  ;;  %v1380_v61 = vrot.slane %v1347_v38, 5 }
  0xdc   : > { %v1359_v28 = vmul.f32 %v1343_v1, %v3353_v31  ;;  %v1382_v34 = vrot.slane %v1348_v35, 4  ;;  %v1384_v51 = vrot.slane %v1349_v29, 3  ;;  %v1390_v25 = vrot.slane %v1353_v49, 7 }
  0xdd   : > { %v1377_v39 = vsel %vm282_vm0, %v1376_v43, %v1344_v10  ;;  %v1392_v48 = vrot.slane %v1354_v53, 6  ;;  %v1394_v30 = vrot.slane %v1355_v44, 5  ;;  %v1396_v17 = vrot.slane %v1356_v21, 4 }
  0xde   : > { %v1379_v2 = vsel %vm285_vm1, %v1378_v60, %v1377_v39  ;;  %v1386_v62 = vrot.slane %v1350_v55, 2  ;;  %v1391_v56 = vsel %vm282_vm0, %v1390_v25, %v1352_v27  ;;  %v1398_v52 = vrot.slane %v1357_v26, 3 }
  0xdf   : > { %v1338_v13 = vadd.f32 %v1321_v6, %v1270_v24  ;;  %v1381_v33 = vsel %vm288_vm2, %v1380_v61, %v1379_v2  ;;  %v1393_v12 = vsel %vm285_vm1, %v1392_v48, %v1391_v56  ;;  %v1400_v1 = vrot.slane %v1358_v57, 2 }
  0xe0   : > { %v1339_v46 = vadd.f32 %v1335_v16, %v1271_v14  ;;  %v1383_v38 = vsel %vm291_vm3, %v1382_v34, %v1381_v33  ;;  %v1388_v35 = vrot.slane %v1351_v58, 1  ;;  %v1395_v10 = vsel %vm288_vm2, %v1394_v30, %v1393_v12 }
  0xe1   : > { %v1385_v29 = vsel %vm294_vm4, %v1384_v51, %v1383_v38  ;;  %v1397_v49 = vsel %vm291_vm3, %v1396_v17, %v1395_v10  ;;  %v1402_v55 = vrot.slane %v1359_v28, 1  ;;  %v1412_v53 = vmul.f32 %v3310_v22, %v3274_v11 }
  0xe2   : > { %v1387_v24 = vsel %vm297_vm5, %v1386_v62, %v1385_v29  ;;  %v1399_v6 = vsel %vm294_vm4, %v1398_v52, %v1397_v49  ;;  %v1413_v14 = vmul.f32 %v3310_v22, %v3277_v15  ;;  %v1414_v16 = vmul.f32 %v3310_v22, %v3284_v42 }
  0xe3   : > { %v1401_v44 = vsel %vm297_vm5, %v1400_v1, %v1399_v6  ;;  %v1415_v58 = vmul.f32 %v3310_v22, %v3287_v47  ;;  %v1416_v27 = vmul.f32 %v3310_v22, %v3290_v45  ;;  %v1417_v21 = vmul.f32 %v3310_v22, %v3297_v50 }
  0xe4   : > { %v1389_v26 = vsel %vm300_vm6, %v1388_v35, %v1387_v24  ;;  %v1418_v57 = vmul.f32 %v3310_v22, %v3300_v59  ;;  %v1420_v43 = vmul.f32 %v3310_v22, %v3332_v18  ;;  %v1422_v60 = vmul.f32 %v3310_v22, %v3316_v36 }
  0xe5   : > { %v1403_v61 = vsel %vm300_vm6, %v1402_v55, %v1401_v44  ;;  %v1419_v28 = vmul.f32 %v3310_v22, %v3303_v40  ;;  %v1423_v34 = vmul.f32 %v3310_v22, %v3319_v37  ;;  %v1424_v51 = vmul.f32 %v3310_v22, %v3335_v19 }
  0xe6   : > { %v1421_v25 = vmul.f32 %v3310_v22, %v3313_v54  ;;  %v1425_v39 = vmul.f32 %v3310_v22, %v3338_v32  ;;  %v1444_v48 = vrot.slane %v1412_v53, 1  ;;  %v1446_v30 = vrot.slane %v1414_v16, 7 }
  0xe7   : > { %v1426_v17 = vmul.f32 %v3310_v22, %v3345_v20  ;;  %v1427_v2 = vmul.f32 %v3310_v22, %v3353_v31  ;;  %v1448_v62 = vrot.slane %v1415_v58, 6  ;;  %v1450_v56 = vrot.slane %v1416_v27, 5 }
  0xe8   : > { %v1445_v52 = vsel %vm282_vm0, %v1413_v14, %v1444_v48  ;;  %v1452_v33 = vrot.slane %v1417_v21, 4  ;;  %v1458_v12 = vrot.slane %v1420_v43, 1  ;;  %v1460_v1 = vrot.slane %v1422_v60, 7 }
  0xe9   : > { %v1447_v38 = vsel %vm285_vm1, %v1446_v30, %v1445_v52  ;;  %v1454_v35 = vrot.slane %v1418_v57, 3  ;;  %v1462_v10 = vrot.slane %v1423_v34, 6  ;;  %v1464_v29 = vrot.slane %v1424_v51, 5 }
  0xea   : > { %v1449_v49 = vsel %vm288_vm2, %v1448_v62, %v1447_v38  ;;  %v1456_v55 = vrot.slane %v1419_v28, 2  ;;  %v1459_v53 = vsel %vm282_vm0, %v1421_v25, %v1458_v12  ;;  %v1466_v24 = vrot.slane %v1425_v39, 4 }
  0xeb   : > { %v1406_v6 = vadd.f32 %v1389_v26, %v1338_v13  ;;  %v1451_v22 = vsel %vm291_vm3, %v1450_v56, %v1449_v49  ;;  %v1461_v16 = vsel %vm285_vm1, %v1460_v1, %v1459_v53  ;;  %v1468_v14 = vrot.slane %v1426_v17, 3 }
  0xec   : > { %v1407_v44 = vadd.f32 %v1403_v61, %v1339_v46  ;;  %v1453_v58 = vsel %vm294_vm4, %v1452_v33, %v1451_v22  ;;  %v1463_v27 = vsel %vm288_vm2, %v1462_v10, %v1461_v16  ;;  %v1470_v21 = vrot.slane %v1427_v2, 2 }
  0xed   : > { %v1455_v57 = vsel %vm297_vm5, %v1454_v35, %v1453_v58  ;;  %v1465_v43 = vsel %vm291_vm3, %v1464_v29, %v1463_v27  ;;  %v1480_v60 = vmul.f32 %v3325_v0, %v3274_v11  ;;  %v1481_v13 = vmul.f32 %v3325_v0, %v3277_v15 }
  0xee   : > { %v1457_v26 = vsel %vm300_vm6, %v1456_v55, %v1455_v57  ;;  %v1467_v28 = vsel %vm294_vm4, %v1466_v24, %v1465_v43  ;;  %v1482_v46 = vmul.f32 %v3325_v0, %v3284_v42  ;;  %v1483_v61 = vmul.f32 %v3325_v0, %v3287_v47 }
  0xef   : > { %v1469_v34 = vsel %vm297_vm5, %v1468_v14, %v1467_v28  ;;  %v1484_v51 = vmul.f32 %v3325_v0, %v3290_v45  ;;  %v1485_v25 = vmul.f32 %v3325_v0, %v3297_v50  ;;  %v1488_v39 = vmul.f32 %v3325_v0, %v3332_v18 }
  0xf0   : > { %v1486_v48 = vmul.f32 %v3325_v0, %v3300_v59  ;;  %v1487_v30 = vmul.f32 %v3325_v0, %v3303_v40  ;;  %v1489_v17 = vmul.f32 %v3325_v0, %v3313_v54  ;;  %v1491_v2 = vmul.f32 %v3325_v0, %v3319_v37 }
  0xf1   : > { %v1471_v62 = vsel %vm300_vm6, %v1470_v21, %v1469_v34  ;;  %v3447_v56 = vadd.f32 %v1457_v26, %v1406_v6  ;;  %v1490_v52 = vmul.f32 %v3325_v0, %v3316_v36  ;;  %v1492_v33 = vmul.f32 %v3325_v0, %v3335_v19 }
  0xf2   : > { %v1493_v12 = vmul.f32 %v3325_v0, %v3338_v32  ;;  %v1512_v1 = vrot.slane %v1480_v60, 2  ;;  %v1513_v38 = vrot.slane %v1481_v13, 1  ;;  %v1516_v35 = vrot.slane %v1483_v61, 7 }
  0xf3   : > { %v1494_v10 = vmul.f32 %v3325_v0, %v3345_v20  ;;  %v1495_v29 = vmul.f32 %v3325_v0, %v3353_v31  ;;  %v1518_v49 = vrot.slane %v1484_v51, 6  ;;  %v1526_v55 = vrot.slane %v1488_v39, 2 }
  0xf4   : > { %v1514_v53 = vsel %vm282_vm0, %v1513_v38, %v1512_v1  ;;  %v1520_v24 = vrot.slane %v1485_v25, 5  ;;  %v1527_v6 = vrot.slane %v1489_v17, 1  ;;  %v1530_v22 = vrot.slane %v1491_v2, 7 }
  0xf5   : > { %v1475_v16 = vadd.f32 %v1471_v62, %v1407_v44  ;;  %v1515_v14 = vsel %vm285_vm1, %v1482_v46, %v1514_v53  ;;  %v1522_v58 = vrot.slane %v1486_v48, 4  ;;  %v1532_v27 = vrot.slane %v1492_v33, 6 }
  0xf6   : > { %v1517_v21 = vsel %vm288_vm2, %v1516_v35, %v1515_v14  ;;  %v1524_v57 = vrot.slane %v1487_v30, 3  ;;  %v1528_v43 = vsel %vm282_vm0, %v1527_v6, %v1526_v55  ;;  %v1534_v60 = vrot.slane %v1493_v12, 5 }
  0xf7   : > { %v1519_v0 = vsel %vm291_vm3, %v1518_v49, %v1517_v21  ;;  %v1529_v13 = vsel %vm285_vm1, %v1490_v52, %v1528_v43  ;;  %v1536_v26 = vrot.slane %v1494_v10, 4  ;;  %v1538_v28 = vrot.slane %v1495_v29, 3 }
  0xf8   : > { %v1521_v61 = vsel %vm294_vm4, %v1520_v24, %v1519_v0  ;;  %v1531_v44 = vsel %vm288_vm2, %v1530_v22, %v1529_v13  ;;  %v1548_v46 = vmul.f32 %v3329_v23, %v3274_v11  ;;  %v1549_v34 = vmul.f32 %v3329_v23, %v3277_v15 }
  0xf9   : > { %v1523_v51 = vsel %vm297_vm5, %v1522_v58, %v1521_v61  ;;  %v1533_v25 = vsel %vm291_vm3, %v1532_v27, %v1531_v44  ;;  %v1550_v39 = vmul.f32 %v3329_v23, %v3284_v42  ;;  %v1551_v48 = vmul.f32 %v3329_v23, %v3287_v47 }
  0xfa   : > { %v1535_v30 = vsel %vm294_vm4, %v1534_v60, %v1533_v25  ;;  %v1552_v17 = vmul.f32 %v3329_v23, %v3290_v45  ;;  %v1553_v2 = vmul.f32 %v3329_v23, %v3297_v50  ;;  %v1554_v62 = vmul.f32 %v3329_v23, %v3300_v59 }
  0xfb   : > { %v1537_v52 = vsel %vm297_vm5, %v1536_v26, %v1535_v30  ;;  %v1555_v33 = vmul.f32 %v3329_v23, %v3303_v40  ;;  %v1556_v12 = vmul.f32 %v3329_v23, %v3332_v18  ;;  %v1557_v1 = vmul.f32 %v3329_v23, %v3313_v54 }
  0xfc   : > { %v1525_v38 = vsel %vm300_vm6, %v1524_v57, %v1523_v51  ;;  %v1558_v35 = vmul.f32 %v3329_v23, %v3316_v36  ;;  %v1559_v10 = vmul.f32 %v3329_v23, %v3319_v37  ;;  %v1560_v29 = vmul.f32 %v3329_v23, %v3335_v19 }
  0xfd   : > { %v1539_v49 = vsel %vm300_vm6, %v1538_v28, %v1537_v52  ;;  %v1561_v55 = vmul.f32 %v3329_v23, %v3338_v32  ;;  %v1580_v53 = vrot.slane %v1548_v46, 3  ;;  %v1581_v24 = vrot.slane %v1549_v34, 2 }
  0xfe   : > { %v1562_v6 = vmul.f32 %v3329_v23, %v3345_v20  ;;  %v1563_v22 = vmul.f32 %v3329_v23, %v3353_v31  ;;  %v1583_v14 = vrot.slane %v1550_v39, 1  ;;  %v1586_v58 = vrot.slane %v1552_v17, 7 }
  0xff   : > { %v1582_v27 = vsel %vm282_vm0, %v1581_v24, %v1580_v53  ;;  %v1588_v21 = vrot.slane %v1553_v2, 6  ;;  %v1594_v57 = vrot.slane %v1556_v12, 3  ;;  %v1595_v43 = vrot.slane %v1557_v1, 2 }
 0x100   : > { %v1584_v60 = vsel %vm285_vm1, %v1583_v14, %v1582_v27  ;;  %v1590_v0 = vrot.slane %v1554_v62, 5  ;;  %v1597_v13 = vrot.slane %v1558_v35, 1  ;;  %v1600_v26 = vrot.slane %v1560_v29, 7 }
 0x101   : > { %v1585_v28 = vsel %vm288_vm2, %v1551_v48, %v1584_v60  ;;  %v1592_v61 = vrot.slane %v1555_v33, 4  ;;  %v1596_v44 = vsel %vm282_vm0, %v1595_v43, %v1594_v57  ;;  %v1602_v46 = vrot.slane %v1561_v55, 6 }
 0x102   : > { %v1587_v23 = vsel %vm291_vm3, %v1586_v58, %v1585_v28  ;;  %v1598_v34 = vsel %vm285_vm1, %v1597_v13, %v1596_v44  ;;  %v1604_v51 = vrot.slane %v1562_v6, 5  ;;  %v1615_v25 = vrot.slane %v3266_v41, %v2371_v7 }
 0x103   : > { %v1542_v39 = vadd.f32 %v1525_v38, %v3447_v56  ;;  %v1589_v30 = vsel %vm294_vm4, %v1588_v21, %v1587_v23  ;;  %v1599_v17 = vsel %vm288_vm2, %v1559_v10, %v1598_v34  ;;  %v1543_v2 = vadd.f32 %v1539_v49, %v1475_v16 }
 0x104   : > { %v1591_v48 = vsel %vm297_vm5, %v1590_v0, %v1589_v30  ;;  %v1601_v62 = vsel %vm291_vm3, %v1600_v26, %v1599_v17  ;;  %v1606_v52 = vrot.slane %v1563_v22, 4  ;;  %v1616_v1 = vmul.f32 %v1615_v25, %v3274_v11 }
 0x105   : > { %v1593_v33 = vsel %vm300_vm6, %v1592_v61, %v1591_v48  ;;  %v1603_v12 = vsel %vm294_vm4, %v1602_v46, %v1601_v62  ;;  %v3523_v7 = vrot.slane %v3266_v41, %v2373_v8  ;;  %v1617_v38 = vmul.f32 %v1615_v25, %v3277_v15 }
 0x106   : > { %v1605_v56 = vsel %vm297_vm5, %v1604_v51, %v1603_v12  ;;  %v1618_v16 = vmul.f32 %v1615_v25, %v3284_v42  ;;  %v1619_v35 = vmul.f32 %v1615_v25, %v3287_v47  ;;  %v3529_v10 = vadd.f32 %v1593_v33, %v1542_v39 }
 0x107   : > { %v1621_v29 = vmul.f32 %v1615_v25, %v3297_v50  ;;  %v1624_v49 = vmul.f32 %v1615_v25, %v3332_v18  ;;  %v3535_v55 = vrot.slane %v3266_v41, %v2375_v9  ;;  %v1620_v8 = vmul.f32 %v1615_v25, %v3290_v45 }
 0x108   : > { %v1625_v53 = vmul.f32 %v1615_v25, %v3313_v54  ;;  %v1626_v24 = vmul.f32 %v1615_v25, %v3316_v36  ;;  %v1627_v6 = vmul.f32 %v1615_v25, %v3319_v37  ;;  %v1607_v22 = vsel %vm300_vm6, %v1606_v52, %v1605_v56 }
 0x109   : > { %v1622_v14 = vmul.f32 %v1615_v25, %v3300_v59  ;;  %v1623_v58 = vmul.f32 %v1615_v25, %v3303_v40  ;;  %v1629_v27 = vmul.f32 %v1615_v25, %v3338_v32  ;;  %v1648_v21 = vrot.slane %v1616_v1, 4 }
 0x10a   : > { %v1649_v57 = vrot.slane %v1617_v38, 3  ;;  %v1651_v9 = vrot.slane %v1618_v16, 2  ;;  %v1653_v43 = vrot.slane %v1619_v35, 1  ;;  %v1630_v60 = vmul.f32 %v1615_v25, %v3345_v20 }
 0x10b   : > { %v1631_v0 = vmul.f32 %v1615_v25, %v3353_v31  ;;  %v1656_v13 = vrot.slane %v1621_v29, 7  ;;  %v1662_v26 = vrot.slane %v1624_v49, 4  ;;  %v1663_v61 = vrot.slane %v1625_v53, 3 }
 0x10c   : > { %v1650_v28 = vsel %vm282_vm0, %v1649_v57, %v1648_v21  ;;  %v1665_v44 = vrot.slane %v1626_v24, 2  ;;  %v1667_v46 = vrot.slane %v1627_v6, 1  ;;  %v1611_v23 = vadd.f32 %v1607_v22, %v1543_v2 }
 0x10d   : > { %v1628_v34 = vmul.f32 %v1615_v25, %v3335_v19  ;;  %v1652_v51 = vsel %vm285_vm1, %v1651_v9, %v1650_v28  ;;  %v1658_v39 = vrot.slane %v1622_v14, 6  ;;  %v1660_v17 = vrot.slane %v1623_v58, 5 }
 0x10e   : > { %v1654_v30 = vsel %vm288_vm2, %v1653_v43, %v1652_v51  ;;  %v1664_v48 = vsel %vm282_vm0, %v1663_v61, %v1662_v26  ;;  %v1670_v62 = vrot.slane %v1629_v27, 7  ;;  %v1672_v12 = vrot.slane %v1630_v60, 6 }
 0x10f   : > { %v1655_v52 = vsel %vm291_vm3, %v1620_v8, %v1654_v30  ;;  %v1666_v33 = vsel %vm285_vm1, %v1665_v44, %v1664_v48  ;;  %v1674_v1 = vrot.slane %v1631_v0, 5  ;;  %v1684_v25 = vmul.f32 %v3523_v7, %v3274_v11 }
 0x110   : > { %v1657_v56 = vsel %vm294_vm4, %v1656_v13, %v1655_v52  ;;  %v1668_v2 = vsel %vm288_vm2, %v1667_v46, %v1666_v33  ;;  %v1685_v38 = vmul.f32 %v3523_v7, %v3277_v15  ;;  %v1686_v29 = vmul.f32 %v3523_v7, %v3284_v42 }
 0x111   : > { %v1659_v16 = vsel %vm297_vm5, %v1658_v39, %v1657_v56  ;;  %v1669_v35 = vsel %vm291_vm3, %v1628_v34, %v1668_v2  ;;  %v1687_v49 = vmul.f32 %v3523_v7, %v3287_v47  ;;  %v1688_v53 = vmul.f32 %v3523_v7, %v3290_v45 }
 0x112   : > { %v1671_v8 = vsel %vm294_vm4, %v1670_v62, %v1669_v35  ;;  %v1689_v24 = vmul.f32 %v3523_v7, %v3297_v50  ;;  %v1690_v6 = vmul.f32 %v3523_v7, %v3300_v59  ;;  %v1691_v14 = vmul.f32 %v3523_v7, %v3303_v40 }
 0x113   : > { %v1673_v22 = vsel %vm297_vm5, %v1672_v12, %v1671_v8  ;;  %v1692_v58 = vmul.f32 %v3523_v7, %v3332_v18  ;;  %v1693_v27 = vmul.f32 %v3523_v7, %v3313_v54  ;;  %v1661_v21 = vsel %vm300_vm6, %v1660_v17, %v1659_v16 }
 0x114   : > { %v1694_v57 = vmul.f32 %v3523_v7, %v3316_v36  ;;  %v1695_v9 = vmul.f32 %v3523_v7, %v3319_v37  ;;  %v1696_v43 = vmul.f32 %v3523_v7, %v3335_v19  ;;  %v1675_v60 = vsel %vm300_vm6, %v1674_v1, %v1673_v22 }
 0x115   : > { %v1698_v0 = vmul.f32 %v3523_v7, %v3345_v20  ;;  %v1716_v13 = vrot.slane %v1684_v25, 5  ;;  %v1717_v26 = vrot.slane %v1685_v38, 4  ;;  %v1699_v28 = vmul.f32 %v3523_v7, %v3353_v31 }
 0x116   : > { %v1719_v61 = vrot.slane %v1686_v29, 3  ;;  %v1721_v44 = vrot.slane %v1687_v49, 2  ;;  %v1723_v46 = vrot.slane %v1688_v53, 1  ;;  %v1726_v51 = vrot.slane %v1690_v6, 7 }
 0x117   : > { %v1718_v34 = vsel %vm282_vm0, %v1717_v26, %v1716_v13  ;;  %v1730_v39 = vrot.slane %v1692_v58, 5  ;;  %v1731_v30 = vrot.slane %v1693_v27, 4  ;;  %v1733_v48 = vrot.slane %v1694_v57, 3 }
 0x118   : > { %v1720_v17 = vsel %vm285_vm1, %v1719_v61, %v1718_v34  ;;  %v1735_v62 = vrot.slane %v1695_v9, 2  ;;  %v1737_v52 = vrot.slane %v1696_v43, 1  ;;  %v1697_v33 = vmul.f32 %v3523_v7, %v3338_v32 }
 0x119   : > { %v1722_v12 = vsel %vm288_vm2, %v1721_v44, %v1720_v17  ;;  %v1732_v1 = vsel %vm282_vm0, %v1731_v30, %v1730_v39  ;;  %v3600_v56 = vrot.slane %v3266_v41, %v3941_v63  ;;  %v1678_v2 = vadd.f32 %v1661_v21, %v3529_v10 }
 0x11a   : > { %v1724_v25 = vsel %vm291_vm3, %v1723_v46, %v1722_v12  ;;  %v1734_v38 = vsel %vm285_vm1, %v1733_v48, %v1732_v1  ;;  %v1740_v16 = vrot.slane %v1698_v0, 7  ;;  %v1679_v35 = vadd.f32 %v1675_v60, %v1611_v23 }
 0x11b   : > { %v1725_v29 = vsel %vm294_vm4, %v1689_v24, %v1724_v25  ;;  %v1728_v49 = vrot.slane %v1691_v14, 6  ;;  %v1736_v7 = vsel %vm288_vm2, %v1735_v62, %v1734_v38  ;;  %v1742_v6 = vrot.slane %v1699_v28, 6 }
 0x11c   : > { %v1727_v8 = vsel %vm297_vm5, %v1726_v51, %v1725_v29  ;;  %v1738_v53 = vsel %vm291_vm3, %v1737_v52, %v1736_v7  ;;  %v1752_v63 = vmul.f32 %v3535_v55, %v3274_v11  ;;  %v1753_v10 = vmul.f32 %v3535_v55, %v3277_v15 }
 0x11d   : > { %v1739_v41 = vsel %vm294_vm4, %v1697_v33, %v1738_v53  ;;  %v1754_v23 = vmul.f32 %v3535_v55, %v3284_v42  ;;  %v1755_v24 = vmul.f32 %v3535_v55, %v3287_v47  ;;  %v1756_v14 = vmul.f32 %v3535_v55, %v3290_v45 }
 0x11e   : > { %v1741_v22 = vsel %vm297_vm5, %v1740_v16, %v1739_v41  ;;  %v1757_v58 = vmul.f32 %v3535_v55, %v3297_v50  ;;  %v1760_v27 = vmul.f32 %v3535_v55, %v3332_v18  ;;  %v1729_v21 = vsel %vm300_vm6, %v1728_v49, %v1727_v8 }
 0x11f   : > { %v1761_v57 = vmul.f32 %v3535_v55, %v3313_v54  ;;  %v1762_v9 = vmul.f32 %v3535_v55, %v3316_v36  ;;  %v1763_v43 = vmul.f32 %v3535_v55, %v3319_v37  ;;  %v1743_v60 = vsel %vm300_vm6, %v1742_v6, %v1741_v22 }
 0x120   : > { %v1759_v0 = vmul.f32 %v3535_v55, %v3303_v40  ;;  %v1764_v13 = vmul.f32 %v3535_v55, %v3335_v19  ;;  %v1765_v26 = vmul.f32 %v3535_v55, %v3338_v32  ;;  %v1784_v28 = vrot.slane %v1752_v63, 6 }
 0x121   : > { %v1785_v61 = vrot.slane %v1753_v10, 5  ;;  %v1787_v44 = vrot.slane %v1754_v23, 4  ;;  %v1789_v46 = vrot.slane %v1755_v24, 3  ;;  %v1767_v34 = vmul.f32 %v3535_v55, %v3353_v31 }
 0x122   : > { %v1791_v51 = vrot.slane %v1756_v14, 2  ;;  %v1793_v39 = vrot.slane %v1757_v58, 1  ;;  %v1798_v30 = vrot.slane %v1760_v27, 6  ;;  %v1799_v48 = vrot.slane %v1761_v57, 5 }
 0x123   : > { %v1786_v17 = vsel %vm282_vm0, %v1785_v61, %v1784_v28  ;;  %v1801_v62 = vrot.slane %v1762_v9, 4  ;;  %v1803_v52 = vrot.slane %v1763_v43, 3  ;;  %v3642_v33 = vadd.f32 %v1729_v21, %v1678_v2 }
 0x124   : > { %v1758_v12 = vmul.f32 %v3535_v55, %v3300_v59  ;;  %v1788_v1 = vsel %vm285_vm1, %v1787_v44, %v1786_v17  ;;  %v1805_v25 = vrot.slane %v1764_v13, 2  ;;  %v3647_v38 = vadd.f32 %v1743_v60, %v1679_v35  ;;  %v3704_v17 = vld [vmem:[%s2382_s30 + $0x38] sm:$0x7] }
 0x125   : > { %v1790_v16 = vsel %vm288_vm2, %v1789_v46, %v1788_v1  ;;  %v1800_v29 = vsel %vm282_vm0, %v1799_v48, %v1798_v30  ;;  %v1807_v49 = vrot.slane %v1765_v26, 1  ;;  %v1766_v7 = vmul.f32 %v3535_v55, %v3345_v20  ;;  %v3701_v30 = vld [vmem:[%s2382_s30 + $0x18] sm:$0x7] }
 0x126   : > { %v1792_v8 = vsel %vm291_vm3, %v1791_v51, %v1790_v16  ;;  %v1796_v2 = vrot.slane %v1759_v0, 7  ;;  %v1802_v53 = vsel %vm285_vm1, %v1801_v62, %v1800_v29  ;;  %v1810_v41 = vrot.slane %v1767_v34, 7  ;;  %v3711_v1 = vld [vmem:[%s2382_s30 + $0x58] sm:$0x7] }
 0x127   : > { %v1794_v6 = vsel %vm294_vm4, %v1793_v39, %v1792_v8  ;;  %v1804_v63 = vsel %vm288_vm2, %v1803_v52, %v1802_v53  ;;  %v1820_v35 = vmul.f32 %v3600_v56, %v3274_v11  ;;  %v1821_v55 = vmul.f32 %v3600_v56, %v3277_v15  ;;  %v3717_v16 = vld [vmem:[%s2382_s30 + $0x98] sm:$0x7] }
 0x128   : > { %v1795_v10 = vsel %vm297_vm5, %v1758_v12, %v1794_v6  ;;  %v1806_v23 = vsel %vm291_vm3, %v1805_v25, %v1804_v63  ;;  %v1822_v24 = vmul.f32 %v3600_v56, %v3284_v42  ;;  %v1823_v14 = vmul.f32 %v3600_v56, %v3287_v47  ;;  %v3714_v25 = vld [vmem:[%s2382_s30 + $0x78] sm:$0x7] }
 0x129   : > { %v1808_v22 = vsel %vm294_vm4, %v1807_v49, %v1806_v23  ;;  %v1824_v58 = vmul.f32 %v3600_v56, %v3290_v45  ;;  %v1825_v11 = vmul.f32 %v3600_v56, %v3297_v50  ;;  %v1797_v27 = vsel %vm300_vm6, %v1796_v2, %v1795_v10  ;;  %v3729_v2 = vld [vmem:[%s2382_s30 + $0xd8] sm:$0x7] }
 0x12a   : > { %v1826_v21 = vmul.f32 %v3600_v56, %v3300_v59  ;;  %v1828_v15 = vmul.f32 %v3600_v56, %v3332_v18  ;;  %v1829_v42 = vmul.f32 %v3600_v56, %v3313_v54  ;;  %v1809_v57 = vsel %vm297_vm5, %v1766_v7, %v1808_v22  ;;  %v3732_v53 = vld [vmem:[%s2382_s30 + $0xf8] sm:$0x7] }
 0x12b   : > { %v1830_v47 = vmul.f32 %v3600_v56, %v3316_v36  ;;  %v1831_v45 = vmul.f32 %v3600_v56, %v3319_v37  ;;  %v1832_v50 = vmul.f32 %v3600_v56, %v3335_v19  ;;  %v1833_v59 = vmul.f32 %v3600_v56, %v3338_v32  ;;  %v3693_v37 = vld [vmem:[%s3933_s1 + $0x18] sm:$0x7] }
 0x12c   : > { %v1834_v18 = vmul.f32 %v3600_v56, %v3345_v20  ;;  %v1852_v9 = vrot.slane %v1820_v35, 7  ;;  %v1853_v43 = vrot.slane %v1821_v55, 6  ;;  %v1855_v54 = vrot.slane %v1822_v24, 5  ;;  %v3741_v63 = vld [vmem:[%s2382_s30 + $0x158] sm:$0x7] }
 0x12d   : > { %v1857_v60 = vrot.slane %v1823_v14, 4  ;;  %v1859_v0 = vrot.slane %v1824_v58, 3  ;;  %v1861_v36 = vrot.slane %v1825_v11, 2  ;;  %v1863_v13 = vrot.slane %v1826_v21, 1  ;;  %v3754_v55 = vld [vmem:[%s2382_s30 + $0x118] sm:$0x7] }
 0x12e   : > { %v1854_v19 = vsel %vm282_vm0, %v1853_v43, %v1852_v9  ;;  %v1866_v32 = vrot.slane %v1828_v15, 7  ;;  %v1867_v26 = vrot.slane %v1829_v42, 6  ;;  %v1869_v28 = vrot.slane %v1830_v47, 5  ;;  %v3757_v24 = vld [vmem:[%s2382_s30 + $0x198] sm:$0x7] }
 0x12f   : > { %v1856_v20 = vsel %vm285_vm1, %v1855_v54, %v1854_v19  ;;  %v1871_v61 = vrot.slane %v1831_v45, 4  ;;  %v1873_v44 = vrot.slane %v1832_v50, 3  ;;  %v1811_v46 = vsel %vm300_vm6, %v1810_v41, %v1809_v57  ;;  %v3744_v41 = vld [vmem:[%s2382_s30 + $0x178] sm:$0x7] }
 0x130   : > { %v1858_v34 = vsel %vm288_vm2, %v1857_v60, %v1856_v20  ;;  %v1868_v51 = vsel %vm282_vm0, %v1867_v26, %v1866_v32  ;;  %v1875_v39 = vrot.slane %v1833_v59, 2  ;;  %v1877_v52 = vrot.slane %v1834_v18, 1  ;;  %v3760_v22 = vld [vmem:[%s2382_s30 + $0x1b8] sm:$0x7] }
 0x131   : > { %v1860_v48 = vsel %vm291_vm3, %v1859_v0, %v1858_v34  ;;  %v1870_v62 = vsel %vm285_vm1, %v1869_v28, %v1868_v51  ;;  %v1887_v12 = vrot.slane %v3693_v37, %v2363_v3  ;;  %v1827_v29 = vmul.f32 %v3600_v56, %v3303_v40  ;;  %v3726_v3 = vld [vmem:[%s2382_s30 + $0xb8] sm:$0x7] }
 0x132   : > { %v1835_v49 = vmul.f32 %v3600_v56, %v3353_v31  ;;  %v1862_v7 = vsel %vm294_vm4, %v1861_v36, %v1860_v48  ;;  %v1872_v8 = vsel %vm288_vm2, %v1871_v61, %v1870_v62  ;;  %v1814_v6 = vadd.f32 %v1797_v27, %v3642_v33  ;;  %v3738_v56 = vld [vmem:[%s2382_s30 + $0x138] sm:$0x7] }
 0x133   : > { %v1864_v40 = vsel %vm297_vm5, %v1863_v13, %v1862_v7  ;;  %v1874_v31 = vsel %vm291_vm3, %v1873_v44, %v1872_v8  ;;  %v1815_v35 = vadd.f32 %v1811_v46, %v3647_v38  ;;  %v1888_v23 = vmul.f32 %v1887_v12, %v3701_v30  ;;  %v3767_v27 = vld [vmem:[%s2382_s30 + $0x1d8] sm:$0x7] }
 0x134   : > { %v1876_v10 = vsel %vm294_vm4, %v1875_v39, %v1874_v31  ;;  %v3751_v33 = vrot.slane %v3693_v37, %v2365_v4  ;;  %v1889_v58 = vmul.f32 %v1887_v12, %v3704_v17  ;;  %v1890_v38 = vmul.f32 %v1887_v12, %v3711_v1  ;;  %v3774_v57 = vld [vmem:[%s2382_s30 + $0x1f8] sm:$0x7]  ;;  %s2287_s30 = smov [#allocation2]  }
 0x135   : > { %v1878_v14 = vsel %vm297_vm5, %v1877_v52, %v1876_v10  ;;  %v1891_v11 = vmul.f32 %v1887_v12, %v3714_v25  ;;  %v1865_v21 = vsel %vm300_vm6, %v1827_v29, %v1864_v40  ;;  %v1892_v15 = vmul.f32 %v1887_v12, %v3717_v16  ;;  %s2227_s4 = sshll.u32 %s2287_s30, 4  ;;  %s2228_s4 = int_to_ptr.vmem [resolvable:$false] %s2227_s4 }
 0x136   : > { %v1879_v4 = vsel %vm300_vm6, %v1835_v49, %v1878_v14  ;;  %v1893_v42 = vmul.f32 %v1887_v12, %v3726_v3  ;;  %v1894_v47 = vmul.f32 %v1887_v12, %v3729_v2  ;;  %v1897_v45 = vmul.f32 %v1887_v12, %v3738_v56  ;;  %s2229_s5 = scalar_lea.vmem %s2228_s4, 512  ;;  %p2230_p0 = scmp.lt.s32.totalorder %s3887_s25, %s2228_s4 }
 0x137   : > { %v1898_v50 = vmul.f32 %v1887_v12, %v3741_v63  ;;  %v1899_v59 = vmul.f32 %v1887_v12, %v3744_v41  ;;  %v1895_v18 = vmul.f32 %v1887_v12, %v3732_v53  ;;  %v1896_v9 = vmul.f32 %v1887_v12, %v3754_v55  ;;  %p2231_p1 = scmp.lt.s32.totalorder %s2229_s5, %s2223_s29 }
 0x138   : > { %v1900_v43 = vmul.f32 %v1887_v12, %v3757_v24  ;;  %v1901_v54 = vmul.f32 %v1887_v12, %v3760_v22  ;;  %v1902_v60 = vmul.f32 %v1887_v12, %v3767_v27  ;;  %v1920_v0 = vrot.slane %v1889_v58, 7 }
 0x139   : > { %v1922_v36 = vrot.slane %v1890_v38, 6  ;;  %v1924_v19 = vrot.slane %v1891_v11, 5  ;;  %v1903_v13 = vmul.f32 %v1887_v12, %v3774_v57  ;;  %v1926_v32 = vrot.slane %v1892_v15, 4  ;;  %p2232_p2 = por %p2231_p1, %p2230_p0 }
 0x13a   : > { %v1928_v26 = vrot.slane %v1893_v42, 3  ;;  %v1934_v20 = vrot.slane %v1897_v45, 7  ;;  %v1921_v28 = vsel %vm282_vm0, %v1920_v0, %v1888_v23  ;;  %v1936_v61 = vrot.slane %v1898_v50, 6 }
 0x13b   : > { %v1938_v44 = vrot.slane %v1899_v59, 5  ;;  %v1940_v46 = vrot.slane %v1900_v43, 4  ;;  %v1923_v34 = vsel %vm285_vm1, %v1922_v36, %v1921_v28  ;;  %v1930_v51 = vrot.slane %v1894_v47, 2  ;;  %p2233_p3 = pnand %p2232_p2, %p2226_p13 }
 0x13c   : > { %v1935_v39 = vsel %vm282_vm0, %v1934_v20, %v1896_v9  ;;  %v1942_v48 = vrot.slane %v1901_v54, 3  ;;  %v1882_v62 = vadd.f32 %v1865_v21, %v1814_v6  ;;  %v1925_v52 = vsel %vm288_vm2, %v1924_v19, %v1923_v34 }
 0x13d   : > { %v1937_v29 = vsel %vm285_vm1, %v1936_v61, %v1935_v39  ;;  %v1944_v12 = vrot.slane %v1902_v60, 2  ;;  %v1883_v49 = vadd.f32 %v1879_v4, %v1815_v35  ;;  %v1927_v7 = vsel %vm291_vm3, %v1926_v32, %v1925_v52 }
 0x13e   : > { %v1932_v8 = vrot.slane %v1895_v18, 1  ;;  %v1939_v40 = vsel %vm288_vm2, %v1938_v44, %v1937_v29  ;;  %v1929_v31 = vsel %vm294_vm4, %v1928_v26, %v1927_v7  ;;  %v1946_v23 = vrot.slane %v1903_v13, 1 }
 0x13f   : > { %v1941_v10 = vsel %vm291_vm3, %v1940_v46, %v1939_v40  ;;  %v1956_v14 = vmul.f32 %v3751_v33, %v3701_v30  ;;  %v1931_v6 = vsel %vm297_vm5, %v1930_v51, %v1929_v31  ;;  %v1957_v35 = vmul.f32 %v3751_v33, %v3704_v17 }
 0x140   : > { %v1943_v58 = vsel %vm294_vm4, %v1942_v48, %v1941_v10  ;;  %v1958_v38 = vmul.f32 %v3751_v33, %v3711_v1  ;;  %v1959_v21 = vmul.f32 %v3751_v33, %v3714_v25  ;;  %v1960_v4 = vmul.f32 %v3751_v33, %v3717_v16 }
 0x141   : > { %v1945_v11 = vsel %vm297_vm5, %v1944_v12, %v1943_v58  ;;  %v1961_v15 = vmul.f32 %v3751_v33, %v3726_v3  ;;  %v1933_v42 = vsel %vm300_vm6, %v1932_v8, %v1931_v6  ;;  %v1962_v47 = vmul.f32 %v3751_v33, %v3729_v2 }
 0x142   : > { %v1964_v45 = vmul.f32 %v3751_v33, %v3754_v55  ;;  %v1966_v50 = vmul.f32 %v3751_v33, %v3741_v63  ;;  %v1947_v59 = vsel %vm300_vm6, %v1946_v23, %v1945_v11  ;;  %v1963_v18 = vmul.f32 %v3751_v33, %v3732_v53 }
 0x143   : > { %v1967_v9 = vmul.f32 %v3751_v33, %v3744_v41  ;;  %v1968_v43 = vmul.f32 %v3751_v33, %v3757_v24  ;;  %v1965_v54 = vmul.f32 %v3751_v33, %v3738_v56  ;;  %v1969_v60 = vmul.f32 %v3751_v33, %v3760_v22 }
 0x144   : > { %v1988_v0 = vrot.slane %v1956_v14, 1  ;;  %v1990_v36 = vrot.slane %v1958_v38, 7  ;;  %v1970_v19 = vmul.f32 %v3751_v33, %v3767_v27  ;;  %v1971_v13 = vmul.f32 %v3751_v33, %v3774_v57 }
 0x145   : > { %v1992_v32 = vrot.slane %v1959_v21, 6  ;;  %v1994_v26 = vrot.slane %v1960_v4, 5  ;;  %v1996_v28 = vrot.slane %v1961_v15, 4  ;;  %v2002_v61 = vrot.slane %v1964_v45, 1 }
 0x146   : > { %v1989_v20 = vsel %vm282_vm0, %v1957_v35, %v1988_v0  ;;  %v2004_v44 = vrot.slane %v1966_v50, 7  ;;  %v1998_v34 = vrot.slane %v1962_v47, 3  ;;  %v2006_v51 = vrot.slane %v1967_v9, 6 }
 0x147   : > { %v1991_v46 = vsel %vm285_vm1, %v1990_v36, %v1989_v20  ;;  %v2008_v39 = vrot.slane %v1968_v43, 5  ;;  %v2003_v52 = vsel %vm282_vm0, %v1965_v54, %v2002_v61  ;;  %v2010_v29 = vrot.slane %v1969_v60, 4 }
 0x148   : > { %v1993_v48 = vsel %vm288_vm2, %v1992_v32, %v1991_v46  ;;  %v2023_v33 = vrot.slane %v3693_v37, %v2367_v5  ;;  %v1950_v12 = vadd.f32 %v1933_v42, %v1882_v62  ;;  %v2005_v8 = vsel %vm285_vm1, %v2004_v44, %v2003_v52 }
 0x149   : > { %v1995_v7 = vsel %vm291_vm3, %v1994_v26, %v1993_v48  ;;  %v1951_v40 = vadd.f32 %v1947_v59, %v1883_v49  ;;  %v2000_v10 = vrot.slane %v1963_v18, 2  ;;  %v2007_v23 = vsel %vm288_vm2, %v2006_v51, %v2005_v8 }
 0x14a   : > { %v1997_v31 = vsel %vm294_vm4, %v1996_v28, %v1995_v7  ;;  %v2009_v6 = vsel %vm291_vm3, %v2008_v39, %v2007_v23  ;;  %v2012_v58 = vrot.slane %v1970_v19, 3  ;;  %v2014_v35 = vrot.slane %v1971_v13, 2 }
 0x14b   : > { %v1999_v14 = vsel %vm297_vm5, %v1998_v34, %v1997_v31  ;;  %v2011_v5 = vsel %vm294_vm4, %v2010_v29, %v2009_v6  ;;  %v2024_v37 = vmul.f32 %v2023_v33, %v3701_v30  ;;  %v2025_v62 = vmul.f32 %v2023_v33, %v3704_v17 }
 0x14c   : > { %v2027_v49 = vmul.f32 %v2023_v33, %v3714_v25  ;;  %v2026_v38 = vmul.f32 %v2023_v33, %v3711_v1  ;;  %v2028_v11 = vmul.f32 %v2023_v33, %v3717_v16  ;;  %v2029_v21 = vmul.f32 %v2023_v33, %v3726_v3 }
 0x14d   : > { %v2032_v4 = vmul.f32 %v2023_v33, %v3754_v55  ;;  %v2001_v15 = vsel %vm300_vm6, %v2000_v10, %v1999_v14  ;;  %v2030_v42 = vmul.f32 %v2023_v33, %v3729_v2  ;;  %v2033_v30 = vmul.f32 %v2023_v33, %v3738_v56 }
 0x14e   : > { %v2035_v17 = vmul.f32 %v2023_v33, %v3744_v41  ;;  %v2013_v25 = vsel %vm297_vm5, %v2012_v58, %v2011_v5  ;;  %v2031_v1 = vmul.f32 %v2023_v33, %v3732_v53  ;;  %v2034_v16 = vmul.f32 %v2023_v33, %v3741_v63 }
 0x14f   : > { %v2036_v47 = vmul.f32 %v2023_v33, %v3757_v24  ;;  %v2037_v3 = vmul.f32 %v2023_v33, %v3760_v22  ;;  %v2056_v55 = vrot.slane %v2024_v37, 2  ;;  %v2057_v45 = vrot.slane %v2025_v62, 1 }
 0x150   : > { %v2060_v50 = vrot.slane %v2027_v49, 7  ;;  %v2038_v2 = vmul.f32 %v2023_v33, %v3767_v27  ;;  %v2039_v56 = vmul.f32 %v2023_v33, %v3774_v57  ;;  %v2062_v41 = vrot.slane %v2028_v11, 6 }
 0x151   : > { %v2070_v59 = vrot.slane %v2032_v4, 2  ;;  %v2058_v18 = vsel %vm282_vm0, %v2057_v45, %v2056_v55  ;;  %v2064_v53 = vrot.slane %v2029_v21, 5  ;;  %v2071_v9 = vrot.slane %v2033_v30, 1 }
 0x152   : > { %v2074_v63 = vrot.slane %v2035_v17, 7  ;;  %v2015_v24 = vsel %vm300_vm6, %v2014_v35, %v2013_v25  ;;  %v2059_v22 = vsel %vm285_vm1, %v2026_v38, %v2058_v18  ;;  %v2066_v43 = vrot.slane %v2030_v42, 4 }
 0x153   : > { %v2076_v54 = vrot.slane %v2036_v47, 6  ;;  %v2061_v60 = vsel %vm288_vm2, %v2060_v50, %v2059_v22  ;;  %v2068_v0 = vrot.slane %v2031_v1, 3  ;;  %v2072_v27 = vsel %vm282_vm0, %v2071_v9, %v2070_v59 }
 0x154   : > { %v2078_v57 = vrot.slane %v2037_v3, 5  ;;  %v2018_v36 = vadd.f32 %v2001_v15, %v1950_v12  ;;  %v2063_v19 = vsel %vm291_vm3, %v2062_v41, %v2061_v60  ;;  %v2073_v13 = vsel %vm285_vm1, %v2034_v16, %v2072_v27 }
 0x155   : > { %v2080_v32 = vrot.slane %v2038_v2, 4  ;;  %v2065_v26 = vsel %vm294_vm4, %v2064_v53, %v2063_v19  ;;  %v2075_v20 = vsel %vm288_vm2, %v2074_v63, %v2073_v13  ;;  %v2082_v28 = vrot.slane %v2039_v56, 3 }
 0x156   : > { %v2019_v61 = vadd.f32 %v2015_v24, %v1951_v40  ;;  %v2067_v44 = vsel %vm297_vm5, %v2066_v43, %v2065_v26  ;;  %v2077_v46 = vsel %vm291_vm3, %v2076_v54, %v2075_v20 }
 0x157   : > { %v2069_v34 = vsel %vm300_vm6, %v2068_v0, %v2067_v44  ;;  %v2079_v51 = vsel %vm294_vm4, %v2078_v57, %v2077_v46 }
 0x158   : > { %v2081_v39 = vsel %vm297_vm5, %v2080_v32, %v2079_v51  ;;  %v2086_v48 = vadd.f32 %v2069_v34, %v2018_v36 }
 0x159   : > { %v2083_v52 = vsel %vm300_vm6, %v2082_v28, %v2081_v39 }
 0x15a   : > { %v2087_v29 = vadd.f32 %v2083_v52, %v2019_v61  ;;  %2089 = vst.msk [vmem:[%s163_s24] sm:$0xff] %vm2088_vm7, %v2086_v48 }
 0x15c   : > { %2090 = vst.msk [vmem:[%s163_s24 + $0x8] sm:$0xff] %vm2088_vm7, %v2087_v29 }
 0x15d   : > { %2236 = shalt.err (!%p2233_p3)
}
 0x15e   : > { %s2237_s6 = scalar_lea.hbm %s3885_s28, 256  ;;  %s2241_s9 = scalar_lea.hbm %s3935_s3, 512 }
 0x15f   : > { %p2238_p4 = scmp.ne.s32.totalorder %s3885_s28, %s2237_s6  ;;  %p2242_p9 = scmp.lt.u32.totalorder %s3885_s28, %s3935_s3 }
 0x160   : > { %p2243_p10 = scmp.lt.u32.totalorder %s2241_s9, %s2237_s6  ;;  %p2245_p12 = scmp.lt.u32.totalorder %s2237_s6, %s3885_s28 }
 0x161   : > { %p2239_p7 = pnand %p2238_p4, %p2348_p5 }
 0x162   : > { %p2244_p11 = por %p2243_p10, %p2242_p9 }
 0x163   : > { %p2240_p8 = pneg %p2239_p7 }
 0x164   : > { %p2246_p13 = por %p2245_p12, %p2244_p11 }
 0x166   : > { %p2247_p0 = pnand %p2246_p13, %p2240_p8 }
 0x168   : > { %2250 = shalt.err (!%p2247_p0)
}
 0x169   : > { %s2288_s17 = smov 128   ;;  %s2289_s19 = smov 8  }
 0x16a   : > { %2182 = dma.vmem_to_hbm [thread:$0]  (%p2348_p5), %s3887_s25, 256, %s3885_s28, %s3891_s16, %s2288_s17, %s2288_s17, %s2289_s19  }
 0x16b PF: > { %p2188_p1 = scmp.ge.s32.totalorder %s2285_s15, 2  ;;  %s2120_s20 = sand.u32 1, %s2273_s12  }
 0x16c   : > { %s2121_s24 = scalar_lea.sflag [#allocation3], %s2120_s20 }
 0x16d   : > { %p2185_p2 = pnand %p2188_p1, %p2352_p6 }
 0x16f   : > { %2268 = dma.done.wait (!%p2185_p2), %s2121_s24, 256  }
 0x170   : > { %2270 = vsyncadd (!%p2185_p2), %s2121_s24, 4294967040  ;;  %p13_p3 = scmp.ge.s32.totalorder %s2335_s18, 4   ;;  %s3942_s12 = smov %s2277_s13 }
 0x171   : > { %s3943_s13 = smov %s2281_s14  ;;  %s3944_s14 = smov %s2346_s21 }
 0x172   : > { %s3945_s15 = smov %s2335_s18  ;;  %15 = sbr.rel (!%p13_p3) target bundleno = 3 (0x3), region = 67 }
 0x179   :  { %2126 = vsyncpa [#allocation3], 1 }
 0x17a   :  { %2128 = vsyncpa [#allocation3 + $0x1], 1 }

</bundles_post_ra>
